<compile_context>
chip_gen: v7x
topology: tpu7x:2x2x1
jax: 0.10.0
libtpu: 0.0.40
codegen_flags: <defaults>
</compile_context>

<pallas_src>
import functools

import jax
import jax.numpy as jnp
from jax.experimental import pallas as pl
from jax.experimental.pallas import tpu as pltpu


# --------------------------- fused whole-model kernel ---------------------------
def make_fused_kernel(num_layers, seq_len, batch, hidden_dim):
    S, B, H = seq_len, batch, hidden_dim

    def kernel(*refs):
        # ref order: emb_flat, [10 refs per GRU layer], fc_w, fc_b, out, hidden
        emb_ref = refs[0]
        idx = 1
        layer_refs = []
        for _ in range(num_layers):
            layer_refs.append(refs[idx:idx + 10])
            idx += 10
        fc_w_ref = refs[idx]
        fc_b_ref = refs[idx + 1]
        out_ref = refs[idx + 2]
        hidden_ref = refs[idx + 3]

        x_flat = emb_ref[...]                       # (S*B, Din) layer input, VMEM-resident
        h_layer0_final = None

        for layer in range(num_layers):
            (w_ih_r, w_ih_z, w_ih_n,
             w_hh_r, w_hh_z, w_hh_n,
             b_r, b_z, b_in, b_hn) = [r[...] for r in layer_refs[layer]]

            # Hoisted input projections: one matmul per gate for ALL timesteps (off the serial path).
            gi_r = jnp.dot(x_flat, w_ih_r, preferred_element_type=jnp.float32) + b_r   # (S*B, H)
            gi_z = jnp.dot(x_flat, w_ih_z, preferred_element_type=jnp.float32) + b_z
            gi_n = jnp.dot(x_flat, w_ih_n, preferred_element_type=jnp.float32) + b_in

            # Sequential recurrence (h_0 = zeros, matching the module).  S is small & static,
            # so a fully unrolled Python loop gives the scheduler maximum visibility.
            h = jnp.zeros((B, H), jnp.float32)
            hs = []
            for t in range(S):
                sl = slice(t * B, (t + 1) * B)      # static slice into hoisted projections
                gh_r = jnp.dot(h, w_hh_r, preferred_element_type=jnp.float32)
                gh_z = jnp.dot(h, w_hh_z, preferred_element_type=jnp.float32)
                gh_n = jnp.dot(h, w_hh_n, preferred_element_type=jnp.float32) + b_hn
                r = jax.nn.sigmoid(gi_r[sl] + gh_r)
                z = jax.nn.sigmoid(gi_z[sl] + gh_z)
                n = jnp.tanh(gi_n[sl] + r * gh_n)
                h = (1.0 - z) * n + z * h
                hs.append(h)

            hidden_ref[layer] = h                   # final hidden of this layer (written once)
            if layer == 0:
                h_layer0_final = h
            if layer + 1 < num_layers:
                x_flat = jnp.concatenate(hs, axis=0)  # (S*B, H) input for the next layer

        # Fused final Linear on layer-0 final hidden (matches `hidden[0]` in the reference forward).
        out_ref[...] = (
            jnp.dot(h_layer0_final, fc_w_ref[...], preferred_element_type=jnp.float32)
            + fc_b_ref[...]
        )

    return kernel


def fused_gru_model(emb_flat, gru_params, fc_w_t, fc_b, *, num_layers, seq_len, batch,
                    hidden_dim, output_size):
    flat_args = [emb_flat]
    for layer in range(num_layers):
        p = gru_params[layer]
        flat_args += [p["w_ih_r"], p["w_ih_z"], p["w_ih_n"],
                      p["w_hh_r"], p["w_hh_z"], p["w_hh_n"],
                      p["b_r"], p["b_z"], p["b_in"], p["b_hn"]]
    flat_args += [fc_w_t, fc_b]

    kernel = make_fused_kernel(num_layers, seq_len, batch, hidden_dim)
    vmem_spec = pl.BlockSpec(memory_space=pltpu.MemorySpace.VMEM)

    out, hidden = pl.pallas_call(
        kernel,
        out_shape=(
            jax.ShapeDtypeStruct((batch, output_size), jnp.float32),
            jax.ShapeDtypeStruct((num_layers, batch, hidden_dim), jnp.float32),
        ),
        in_specs=[vmem_spec] * len(flat_args),
        out_specs=(vmem_spec, vmem_spec),
    )(*flat_args)
    return out, hidden


# ------------------------------- parameters ----------------------------------
def init_params(key, input_size, output_size, embedding_dim, hidden_dim, num_layers):
    ks = jax.random.split(key, 2 + 4 * num_layers + 2)
    params = {}
    params["embedding"] = jax.random.normal(ks[0], (input_size, embedding_dim), jnp.float32)
    scale = 1.0 / jnp.sqrt(hidden_dim)
    H = hidden_dim
    params["gru"] = []
    for layer in range(num_layers):
        din = embedding_dim if layer == 0 else hidden_dim
        k0, k1, k2, k3 = ks[2 + 4 * layer: 2 + 4 * layer + 4]
        # PyTorch-format weights: (3H, din) / (3H, H), gate order r, z, n.
        w_ih = jax.random.uniform(k0, (3 * H, din), jnp.float32, -scale, scale)
        w_hh = jax.random.uniform(k1, (3 * H, H), jnp.float32, -scale, scale)
        b_ih = jax.random.uniform(k2, (3 * H,), jnp.float32, -scale, scale)
        b_hh = jax.random.uniform(k3, (3 * H,), jnp.float32, -scale, scale)
        params["gru"].append(
            dict(
                # split per gate + transpose to (din, H)/(H, H) so kernel matmuls are row-major
                w_ih_r=w_ih[:H].T, w_ih_z=w_ih[H:2 * H].T, w_ih_n=w_ih[2 * H:].T,
                w_hh_r=w_hh[:H].T, w_hh_z=w_hh[H:2 * H].T, w_hh_n=w_hh[2 * H:].T,
                # r/z biases pre-combined; n-gate b_hh kept separate (scaled by r)
                b_r=(b_ih[:H] + b_hh[:H]).reshape(1, H),
                b_z=(b_ih[H:2 * H] + b_hh[H:2 * H]).reshape(1, H),
                b_in=b_ih[2 * H:].reshape(1, H),
                b_hn=b_hh[2 * H:].reshape(1, H),
            )
        )
    fs = 1.0 / jnp.sqrt(hidden_dim)
    params["fc_w_t"] = jax.random.uniform(ks[-2], (hidden_dim, output_size), jnp.float32, -fs, fs)
    params["fc_b"] = jax.random.uniform(ks[-1], (1, output_size), jnp.float32, -fs, fs)
    return params


# ------------------------------- full forward ---------------------------------
@functools.partial(jax.jit, static_argnums=(2,))
def gru_model_forward(x_tokens, params, num_layers):
    S, B = x_tokens.shape
    E = params["embedding"].shape[1]
    H = params["gru"][0]["w_hh_r"].shape[0]
    O = params["fc_w_t"].shape[1]

    # Embedding lookup (gather) kept as plain-JAX glue outside the kernel.
    emb = jnp.take(params["embedding"], x_tokens, axis=0)      # (S, B, E)
    # TODO(synk): nn.Dropout(0.5) and inter-layer GRU dropout are train-mode stochastic ops;
    # eval-mode semantics (identity) are implemented here.
    emb_flat = emb.reshape(S * B, E)

    output, hidden = fused_gru_model(
        emb_flat, params["gru"], params["fc_w_t"], params["fc_b"],
        num_layers=num_layers, seq_len=S, batch=B, hidden_dim=H, output_size=O,
    )
    return output, hidden


if __name__ == "__main__":
    input_size = 50      # vocab
    output_size = 8
    embedding_dim = 16
    hidden_dim = 32
    num_layers = 2
    seq_len = 8
    batch = 4

    key = jax.random.PRNGKey(0)
    k_params, k_x = jax.random.split(key)
    params = init_params(k_params, input_size, output_size, embedding_dim, hidden_dim, num_layers)
    x_tokens = jax.random.randint(k_x, (seq_len, batch), 0, input_size, dtype=jnp.int32)

    output, hidden = gru_model_forward(x_tokens, params, num_layers)
    jax.block_until_ready((output, hidden))
    assert output.shape == (batch, output_size)
    assert hidden.shape == (num_layers, batch, hidden_dim)
    assert bool(jnp.all(jnp.isfinite(output))) and bool(jnp.all(jnp.isfinite(hidden)))
    print("KERNEL_OK")
</pallas_src>

<mosaic_0001>
module attributes {stable_mosaic.version = 11 : i64} {
  func.func @kernel(%arg0: memref<32x16xf32, #tpu.memory_space<vmem>>, %arg1: memref<16x32xf32, #tpu.memory_space<vmem>>, %arg2: memref<16x32xf32, #tpu.memory_space<vmem>>, %arg3: memref<16x32xf32, #tpu.memory_space<vmem>>, %arg4: memref<32x32xf32, #tpu.memory_space<vmem>>, %arg5: memref<32x32xf32, #tpu.memory_space<vmem>>, %arg6: memref<32x32xf32, #tpu.memory_space<vmem>>, %arg7: memref<1x32xf32, #tpu.memory_space<vmem>>, %arg8: memref<1x32xf32, #tpu.memory_space<vmem>>, %arg9: memref<1x32xf32, #tpu.memory_space<vmem>>, %arg10: memref<1x32xf32, #tpu.memory_space<vmem>>, %arg11: memref<32x32xf32, #tpu.memory_space<vmem>>, %arg12: memref<32x32xf32, #tpu.memory_space<vmem>>, %arg13: memref<32x32xf32, #tpu.memory_space<vmem>>, %arg14: memref<32x32xf32, #tpu.memory_space<vmem>>, %arg15: memref<32x32xf32, #tpu.memory_space<vmem>>, %arg16: memref<32x32xf32, #tpu.memory_space<vmem>>, %arg17: memref<1x32xf32, #tpu.memory_space<vmem>>, %arg18: memref<1x32xf32, #tpu.memory_space<vmem>>, %arg19: memref<1x32xf32, #tpu.memory_space<vmem>>, %arg20: memref<1x32xf32, #tpu.memory_space<vmem>>, %arg21: memref<32x8xf32, #tpu.memory_space<vmem>>, %arg22: memref<1x8xf32, #tpu.memory_space<vmem>>, %arg23: memref<4x8xf32, #tpu.memory_space<vmem>>, %arg24: memref<2x4x32xf32, #tpu.memory_space<vmem>>) attributes {dimension_semantics = [], scalar_prefetch = 0 : i64, scratch_operands = 0 : i64, tpu.core_type = #tpu.core_type<tc>} {
    %c0 = arith.constant 0 : index
    %c0_0 = arith.constant 0 : index
    %0 = vector.load %arg0[%c0, %c0_0] : memref<32x16xf32, #tpu.memory_space<vmem>>, vector<32x16xf32>
    %c0_1 = arith.constant 0 : index
    %c0_2 = arith.constant 0 : index
    %1 = vector.load %arg1[%c0_1, %c0_2] : memref<16x32xf32, #tpu.memory_space<vmem>>, vector<16x32xf32>
    %c0_3 = arith.constant 0 : index
    %c0_4 = arith.constant 0 : index
    %2 = vector.load %arg2[%c0_3, %c0_4] : memref<16x32xf32, #tpu.memory_space<vmem>>, vector<16x32xf32>
    %c0_5 = arith.constant 0 : index
    %c0_6 = arith.constant 0 : index
    %3 = vector.load %arg3[%c0_5, %c0_6] : memref<16x32xf32, #tpu.memory_space<vmem>>, vector<16x32xf32>
    %c0_7 = arith.constant 0 : index
    %c0_8 = arith.constant 0 : index
    %4 = vector.load %arg4[%c0_7, %c0_8] : memref<32x32xf32, #tpu.memory_space<vmem>>, vector<32x32xf32>
    %c0_9 = arith.constant 0 : index
    %c0_10 = arith.constant 0 : index
    %5 = vector.load %arg5[%c0_9, %c0_10] : memref<32x32xf32, #tpu.memory_space<vmem>>, vector<32x32xf32>
    %c0_11 = arith.constant 0 : index
    %c0_12 = arith.constant 0 : index
    %6 = vector.load %arg6[%c0_11, %c0_12] : memref<32x32xf32, #tpu.memory_space<vmem>>, vector<32x32xf32>
    %c0_13 = arith.constant 0 : index
    %c0_14 = arith.constant 0 : index
    %7 = vector.load %arg7[%c0_13, %c0_14] : memref<1x32xf32, #tpu.memory_space<vmem>>, vector<1x32xf32>
    %c0_15 = arith.constant 0 : index
    %c0_16 = arith.constant 0 : index
    %8 = vector.load %arg8[%c0_15, %c0_16] : memref<1x32xf32, #tpu.memory_space<vmem>>, vector<1x32xf32>
    %c0_17 = arith.constant 0 : index
    %c0_18 = arith.constant 0 : index
    %9 = vector.load %arg9[%c0_17, %c0_18] : memref<1x32xf32, #tpu.memory_space<vmem>>, vector<1x32xf32>
    %c0_19 = arith.constant 0 : index
    %c0_20 = arith.constant 0 : index
    %10 = vector.load %arg10[%c0_19, %c0_20] : memref<1x32xf32, #tpu.memory_space<vmem>>, vector<1x32xf32>
    %cst = arith.constant dense<0.000000e+00> : vector<32x32xf32>
    %11 = tpu.matmul %0, %1, %cst {dimension_numbers = #tpu.dot_dimension_numbers<[1], [0], [0], [1], [0, 0, 1, 1], [], []>} : vector<32x16xf32>, vector<16x32xf32>, vector<32x32xf32> -> vector<32x32xf32>
    %12 = vector.broadcast %7 : vector<1x32xf32> to vector<32x32xf32>
    %13 = arith.addf %11, %12 : vector<32x32xf32>
    %cst_21 = arith.constant dense<0.000000e+00> : vector<32x32xf32>
    %14 = tpu.matmul %0, %2, %cst_21 {dimension_numbers = #tpu.dot_dimension_numbers<[1], [0], [0], [1], [0, 0, 1, 1], [], []>} : vector<32x16xf32>, vector<16x32xf32>, vector<32x32xf32> -> vector<32x32xf32>
    %15 = vector.broadcast %8 : vector<1x32xf32> to vector<32x32xf32>
    %16 = arith.addf %14, %15 : vector<32x32xf32>
    %cst_22 = arith.constant dense<0.000000e+00> : vector<32x32xf32>
    %17 = tpu.matmul %0, %3, %cst_22 {dimension_numbers = #tpu.dot_dimension_numbers<[1], [0], [0], [1], [0, 0, 1, 1], [], []>} : vector<32x16xf32>, vector<16x32xf32>, vector<32x32xf32> -> vector<32x32xf32>
    %18 = vector.broadcast %9 : vector<1x32xf32> to vector<32x32xf32>
    %19 = arith.addf %17, %18 : vector<32x32xf32>
    %cst_23 = arith.constant 0.000000e+00 : f32
    %20 = vector.broadcast %cst_23 : f32 to vector<4x32xf32>
    %cst_24 = arith.constant dense<0.000000e+00> : vector<4x32xf32>
    %21 = tpu.matmul %20, %4, %cst_24 {dimension_numbers = #tpu.dot_dimension_numbers<[1], [0], [0], [1], [0, 0, 1, 1], [], []>} : vector<4x32xf32>, vector<32x32xf32>, vector<4x32xf32> -> vector<4x32xf32>
    %cst_25 = arith.constant dense<0.000000e+00> : vector<4x32xf32>
    %22 = tpu.matmul %20, %5, %cst_25 {dimension_numbers = #tpu.dot_dimension_numbers<[1], [0], [0], [1], [0, 0, 1, 1], [], []>} : vector<4x32xf32>, vector<32x32xf32>, vector<4x32xf32> -> vector<4x32xf32>
    %cst_26 = arith.constant dense<0.000000e+00> : vector<4x32xf32>
    %23 = tpu.matmul %20, %6, %cst_26 {dimension_numbers = #tpu.dot_dimension_numbers<[1], [0], [0], [1], [0, 0, 1, 1], [], []>} : vector<4x32xf32>, vector<32x32xf32>, vector<4x32xf32> -> vector<4x32xf32>
    %24 = vector.broadcast %10 : vector<1x32xf32> to vector<4x32xf32>
    %25 = arith.addf %23, %24 : vector<4x32xf32>
    %26 = vector.extract_strided_slice %13 {offsets = [0, 0], sizes = [4, 32], strides = [1, 1]} : vector<32x32xf32> to vector<4x32xf32>
    %27 = arith.addf %26, %21 : vector<4x32xf32>
    %28 = arith.negf %27 : vector<4x32xf32>
    %29 = math.exp %28 : vector<4x32xf32>
    %cst_27 = arith.constant 1.000000e+00 : f32
    %30 = vector.broadcast %cst_27 : f32 to vector<4x32xf32>
    %31 = arith.addf %30, %29 : vector<4x32xf32>
    %32 = arith.divf %30, %31 : vector<4x32xf32>
    %33 = vector.extract_strided_slice %16 {offsets = [0, 0], sizes = [4, 32], strides = [1, 1]} : vector<32x32xf32> to vector<4x32xf32>
    %34 = arith.addf %33, %22 : vector<4x32xf32>
    %35 = arith.negf %34 : vector<4x32xf32>
    %36 = math.exp %35 : vector<4x32xf32>
    %cst_28 = arith.constant 1.000000e+00 : f32
    %37 = vector.broadcast %cst_28 : f32 to vector<4x32xf32>
    %38 = arith.addf %37, %36 : vector<4x32xf32>
    %39 = arith.divf %37, %38 : vector<4x32xf32>
    %40 = vector.extract_strided_slice %19 {offsets = [0, 0], sizes = [4, 32], strides = [1, 1]} : vector<32x32xf32> to vector<4x32xf32>
    %41 = arith.mulf %32, %25 : vector<4x32xf32>
    %42 = arith.addf %40, %41 : vector<4x32xf32>
    %43 = math.tanh %42 : vector<4x32xf32>
    %cst_29 = arith.constant 1.000000e+00 : f32
    %44 = vector.broadcast %cst_29 : f32 to vector<4x32xf32>
    %45 = arith.subf %44, %39 : vector<4x32xf32>
    %46 = arith.mulf %45, %43 : vector<4x32xf32>
    %47 = arith.mulf %39, %20 : vector<4x32xf32>
    %48 = arith.addf %46, %47 : vector<4x32xf32>
    %cst_30 = arith.constant dense<0.000000e+00> : vector<4x32xf32>
    %49 = tpu.matmul %48, %4, %cst_30 {dimension_numbers = #tpu.dot_dimension_numbers<[1], [0], [0], [1], [0, 0, 1, 1], [], []>} : vector<4x32xf32>, vector<32x32xf32>, vector<4x32xf32> -> vector<4x32xf32>
    %cst_31 = arith.constant dense<0.000000e+00> : vector<4x32xf32>
    %50 = tpu.matmul %48, %5, %cst_31 {dimension_numbers = #tpu.dot_dimension_numbers<[1], [0], [0], [1], [0, 0, 1, 1], [], []>} : vector<4x32xf32>, vector<32x32xf32>, vector<4x32xf32> -> vector<4x32xf32>
    %cst_32 = arith.constant dense<0.000000e+00> : vector<4x32xf32>
    %51 = tpu.matmul %48, %6, %cst_32 {dimension_numbers = #tpu.dot_dimension_numbers<[1], [0], [0], [1], [0, 0, 1, 1], [], []>} : vector<4x32xf32>, vector<32x32xf32>, vector<4x32xf32> -> vector<4x32xf32>
    %52 = vector.broadcast %10 : vector<1x32xf32> to vector<4x32xf32>
    %53 = arith.addf %51, %52 : vector<4x32xf32>
    %54 = vector.extract_strided_slice %13 {offsets = [4, 0], sizes = [4, 32], strides = [1, 1]} : vector<32x32xf32> to vector<4x32xf32>
    %55 = arith.addf %54, %49 : vector<4x32xf32>
    %56 = arith.negf %55 : vector<4x32xf32>
    %57 = math.exp %56 : vector<4x32xf32>
    %cst_33 = arith.constant 1.000000e+00 : f32
    %58 = vector.broadcast %cst_33 : f32 to vector<4x32xf32>
    %59 = arith.addf %58, %57 : vector<4x32xf32>
    %60 = arith.divf %58, %59 : vector<4x32xf32>
    %61 = vector.extract_strided_slice %16 {offsets = [4, 0], sizes = [4, 32], strides = [1, 1]} : vector<32x32xf32> to vector<4x32xf32>
    %62 = arith.addf %61, %50 : vector<4x32xf32>
    %63 = arith.negf %62 : vector<4x32xf32>
    %64 = math.exp %63 : vector<4x32xf32>
    %cst_34 = arith.constant 1.000000e+00 : f32
    %65 = vector.broadcast %cst_34 : f32 to vector<4x32xf32>
    %66 = arith.addf %65, %64 : vector<4x32xf32>
    %67 = arith.divf %65, %66 : vector<4x32xf32>
    %68 = vector.extract_strided_slice %19 {offsets = [4, 0], sizes = [4, 32], strides = [1, 1]} : vector<32x32xf32> to vector<4x32xf32>
    %69 = arith.mulf %60, %53 : vector<4x32xf32>
    %70 = arith.addf %68, %69 : vector<4x32xf32>
    %71 = math.tanh %70 : vector<4x32xf32>
    %cst_35 = arith.constant 1.000000e+00 : f32
    %72 = vector.broadcast %cst_35 : f32 to vector<4x32xf32>
    %73 = arith.subf %72, %67 : vector<4x32xf32>
    %74 = arith.mulf %73, %71 : vector<4x32xf32>
    %75 = arith.mulf %67, %48 : vector<4x32xf32>
    %76 = arith.addf %74, %75 : vector<4x32xf32>
    %cst_36 = arith.constant dense<0.000000e+00> : vector<4x32xf32>
    %77 = tpu.matmul %76, %4, %cst_36 {dimension_numbers = #tpu.dot_dimension_numbers<[1], [0], [0], [1], [0, 0, 1, 1], [], []>} : vector<4x32xf32>, vector<32x32xf32>, vector<4x32xf32> -> vector<4x32xf32>
    %cst_37 = arith.constant dense<0.000000e+00> : vector<4x32xf32>
    %78 = tpu.matmul %76, %5, %cst_37 {dimension_numbers = #tpu.dot_dimension_numbers<[1], [0], [0], [1], [0, 0, 1, 1], [], []>} : vector<4x32xf32>, vector<32x32xf32>, vector<4x32xf32> -> vector<4x32xf32>
    %cst_38 = arith.constant dense<0.000000e+00> : vector<4x32xf32>
    %79 = tpu.matmul %76, %6, %cst_38 {dimension_numbers = #tpu.dot_dimension_numbers<[1], [0], [0], [1], [0, 0, 1, 1], [], []>} : vector<4x32xf32>, vector<32x32xf32>, vector<4x32xf32> -> vector<4x32xf32>
    %80 = vector.broadcast %10 : vector<1x32xf32> to vector<4x32xf32>
    %81 = arith.addf %79, %80 : vector<4x32xf32>
    %82 = vector.extract_strided_slice %13 {offsets = [8, 0], sizes = [4, 32], strides = [1, 1]} : vector<32x32xf32> to vector<4x32xf32>
    %83 = arith.addf %82, %77 : vector<4x32xf32>
    %84 = arith.negf %83 : vector<4x32xf32>
    %85 = math.exp %84 : vector<4x32xf32>
    %cst_39 = arith.constant 1.000000e+00 : f32
    %86 = vector.broadcast %cst_39 : f32 to vector<4x32xf32>
    %87 = arith.addf %86, %85 : vector<4x32xf32>
    %88 = arith.divf %86, %87 : vector<4x32xf32>
    %89 = vector.extract_strided_slice %16 {offsets = [8, 0], sizes = [4, 32], strides = [1, 1]} : vector<32x32xf32> to vector<4x32xf32>
    %90 = arith.addf %89, %78 : vector<4x32xf32>
    %91 = arith.negf %90 : vector<4x32xf32>
    %92 = math.exp %91 : vector<4x32xf32>
    %cst_40 = arith.constant 1.000000e+00 : f32
    %93 = vector.broadcast %cst_40 : f32 to vector<4x32xf32>
    %94 = arith.addf %93, %92 : vector<4x32xf32>
    %95 = arith.divf %93, %94 : vector<4x32xf32>
    %96 = vector.extract_strided_slice %19 {offsets = [8, 0], sizes = [4, 32], strides = [1, 1]} : vector<32x32xf32> to vector<4x32xf32>
    %97 = arith.mulf %88, %81 : vector<4x32xf32>
    %98 = arith.addf %96, %97 : vector<4x32xf32>
    %99 = math.tanh %98 : vector<4x32xf32>
    %cst_41 = arith.constant 1.000000e+00 : f32
    %100 = vector.broadcast %cst_41 : f32 to vector<4x32xf32>
    %101 = arith.subf %100, %95 : vector<4x32xf32>
    %102 = arith.mulf %101, %99 : vector<4x32xf32>
    %103 = arith.mulf %95, %76 : vector<4x32xf32>
    %104 = arith.addf %102, %103 : vector<4x32xf32>
    %cst_42 = arith.constant dense<0.000000e+00> : vector<4x32xf32>
    %105 = tpu.matmul %104, %4, %cst_42 {dimension_numbers = #tpu.dot_dimension_numbers<[1], [0], [0], [1], [0, 0, 1, 1], [], []>} : vector<4x32xf32>, vector<32x32xf32>, vector<4x32xf32> -> vector<4x32xf32>
    %cst_43 = arith.constant dense<0.000000e+00> : vector<4x32xf32>
    %106 = tpu.matmul %104, %5, %cst_43 {dimension_numbers = #tpu.dot_dimension_numbers<[1], [0], [0], [1], [0, 0, 1, 1], [], []>} : vector<4x32xf32>, vector<32x32xf32>, vector<4x32xf32> -> vector<4x32xf32>
    %cst_44 = arith.constant dense<0.000000e+00> : vector<4x32xf32>
    %107 = tpu.matmul %104, %6, %cst_44 {dimension_numbers = #tpu.dot_dimension_numbers<[1], [0], [0], [1], [0, 0, 1, 1], [], []>} : vector<4x32xf32>, vector<32x32xf32>, vector<4x32xf32> -> vector<4x32xf32>
    %108 = vector.broadcast %10 : vector<1x32xf32> to vector<4x32xf32>
    %109 = arith.addf %107, %108 : vector<4x32xf32>
    %110 = vector.extract_strided_slice %13 {offsets = [12, 0], sizes = [4, 32], strides = [1, 1]} : vector<32x32xf32> to vector<4x32xf32>
    %111 = arith.addf %110, %105 : vector<4x32xf32>
    %112 = arith.negf %111 : vector<4x32xf32>
    %113 = math.exp %112 : vector<4x32xf32>
    %cst_45 = arith.constant 1.000000e+00 : f32
    %114 = vector.broadcast %cst_45 : f32 to vector<4x32xf32>
    %115 = arith.addf %114, %113 : vector<4x32xf32>
    %116 = arith.divf %114, %115 : vector<4x32xf32>
    %117 = vector.extract_strided_slice %16 {offsets = [12, 0], sizes = [4, 32], strides = [1, 1]} : vector<32x32xf32> to vector<4x32xf32>
    %118 = arith.addf %117, %106 : vector<4x32xf32>
    %119 = arith.negf %118 : vector<4x32xf32>
    %120 = math.exp %119 : vector<4x32xf32>
    %cst_46 = arith.constant 1.000000e+00 : f32
    %121 = vector.broadcast %cst_46 : f32 to vector<4x32xf32>
    %122 = arith.addf %121, %120 : vector<4x32xf32>
    %123 = arith.divf %121, %122 : vector<4x32xf32>
    %124 = vector.extract_strided_slice %19 {offsets = [12, 0], sizes = [4, 32], strides = [1, 1]} : vector<32x32xf32> to vector<4x32xf32>
    %125 = arith.mulf %116, %109 : vector<4x32xf32>
    %126 = arith.addf %124, %125 : vector<4x32xf32>
    %127 = math.tanh %126 : vector<4x32xf32>
    %cst_47 = arith.constant 1.000000e+00 : f32
    %128 = vector.broadcast %cst_47 : f32 to vector<4x32xf32>
    %129 = arith.subf %128, %123 : vector<4x32xf32>
    %130 = arith.mulf %129, %127 : vector<4x32xf32>
    %131 = arith.mulf %123, %104 : vector<4x32xf32>
    %132 = arith.addf %130, %131 : vector<4x32xf32>
    %cst_48 = arith.constant dense<0.000000e+00> : vector<4x32xf32>
    %133 = tpu.matmul %132, %4, %cst_48 {dimension_numbers = #tpu.dot_dimension_numbers<[1], [0], [0], [1], [0, 0, 1, 1], [], []>} : vector<4x32xf32>, vector<32x32xf32>, vector<4x32xf32> -> vector<4x32xf32>
    %cst_49 = arith.constant dense<0.000000e+00> : vector<4x32xf32>
    %134 = tpu.matmul %132, %5, %cst_49 {dimension_numbers = #tpu.dot_dimension_numbers<[1], [0], [0], [1], [0, 0, 1, 1], [], []>} : vector<4x32xf32>, vector<32x32xf32>, vector<4x32xf32> -> vector<4x32xf32>
    %cst_50 = arith.constant dense<0.000000e+00> : vector<4x32xf32>
    %135 = tpu.matmul %132, %6, %cst_50 {dimension_numbers = #tpu.dot_dimension_numbers<[1], [0], [0], [1], [0, 0, 1, 1], [], []>} : vector<4x32xf32>, vector<32x32xf32>, vector<4x32xf32> -> vector<4x32xf32>
    %136 = vector.broadcast %10 : vector<1x32xf32> to vector<4x32xf32>
    %137 = arith.addf %135, %136 : vector<4x32xf32>
    %138 = vector.extract_strided_slice %13 {offsets = [16, 0], sizes = [4, 32], strides = [1, 1]} : vector<32x32xf32> to vector<4x32xf32>
    %139 = arith.addf %138, %133 : vector<4x32xf32>
    %140 = arith.negf %139 : vector<4x32xf32>
    %141 = math.exp %140 : vector<4x32xf32>
    %cst_51 = arith.constant 1.000000e+00 : f32
    %142 = vector.broadcast %cst_51 : f32 to vector<4x32xf32>
    %143 = arith.addf %142, %141 : vector<4x32xf32>
    %144 = arith.divf %142, %143 : vector<4x32xf32>
    %145 = vector.extract_strided_slice %16 {offsets = [16, 0], sizes = [4, 32], strides = [1, 1]} : vector<32x32xf32> to vector<4x32xf32>
    %146 = arith.addf %145, %134 : vector<4x32xf32>
    %147 = arith.negf %146 : vector<4x32xf32>
    %148 = math.exp %147 : vector<4x32xf32>
    %cst_52 = arith.constant 1.000000e+00 : f32
    %149 = vector.broadcast %cst_52 : f32 to vector<4x32xf32>
    %150 = arith.addf %149, %148 : vector<4x32xf32>
    %151 = arith.divf %149, %150 : vector<4x32xf32>
    %152 = vector.extract_strided_slice %19 {offsets = [16, 0], sizes = [4, 32], strides = [1, 1]} : vector<32x32xf32> to vector<4x32xf32>
    %153 = arith.mulf %144, %137 : vector<4x32xf32>
    %154 = arith.addf %152, %153 : vector<4x32xf32>
    %155 = math.tanh %154 : vector<4x32xf32>
    %cst_53 = arith.constant 1.000000e+00 : f32
    %156 = vector.broadcast %cst_53 : f32 to vector<4x32xf32>
    %157 = arith.subf %156, %151 : vector<4x32xf32>
    %158 = arith.mulf %157, %155 : vector<4x32xf32>
    %159 = arith.mulf %151, %132 : vector<4x32xf32>
    %160 = arith.addf %158, %159 : vector<4x32xf32>
    %cst_54 = arith.constant dense<0.000000e+00> : vector<4x32xf32>
    %161 = tpu.matmul %160, %4, %cst_54 {dimension_numbers = #tpu.dot_dimension_numbers<[1], [0], [0], [1], [0, 0, 1, 1], [], []>} : vector<4x32xf32>, vector<32x32xf32>, vector<4x32xf32> -> vector<4x32xf32>
    %cst_55 = arith.constant dense<0.000000e+00> : vector<4x32xf32>
    %162 = tpu.matmul %160, %5, %cst_55 {dimension_numbers = #tpu.dot_dimension_numbers<[1], [0], [0], [1], [0, 0, 1, 1], [], []>} : vector<4x32xf32>, vector<32x32xf32>, vector<4x32xf32> -> vector<4x32xf32>
    %cst_56 = arith.constant dense<0.000000e+00> : vector<4x32xf32>
    %163 = tpu.matmul %160, %6, %cst_56 {dimension_numbers = #tpu.dot_dimension_numbers<[1], [0], [0], [1], [0, 0, 1, 1], [], []>} : vector<4x32xf32>, vector<32x32xf32>, vector<4x32xf32> -> vector<4x32xf32>
    %164 = vector.broadcast %10 : vector<1x32xf32> to vector<4x32xf32>
    %165 = arith.addf %163, %164 : vector<4x32xf32>
    %166 = vector.extract_strided_slice %13 {offsets = [20, 0], sizes = [4, 32], strides = [1, 1]} : vector<32x32xf32> to vector<4x32xf32>
    %167 = arith.addf %166, %161 : vector<4x32xf32>
    %168 = arith.negf %167 : vector<4x32xf32>
    %169 = math.exp %168 : vector<4x32xf32>
    %cst_57 = arith.constant 1.000000e+00 : f32
    %170 = vector.broadcast %cst_57 : f32 to vector<4x32xf32>
    %171 = arith.addf %170, %169 : vector<4x32xf32>
    %172 = arith.divf %170, %171 : vector<4x32xf32>
    %173 = vector.extract_strided_slice %16 {offsets = [20, 0], sizes = [4, 32], strides = [1, 1]} : vector<32x32xf32> to vector<4x32xf32>
    %174 = arith.addf %173, %162 : vector<4x32xf32>
    %175 = arith.negf %174 : vector<4x32xf32>
    %176 = math.exp %175 : vector<4x32xf32>
    %cst_58 = arith.constant 1.000000e+00 : f32
    %177 = vector.broadcast %cst_58 : f32 to vector<4x32xf32>
    %178 = arith.addf %177, %176 : vector<4x32xf32>
    %179 = arith.divf %177, %178 : vector<4x32xf32>
    %180 = vector.extract_strided_slice %19 {offsets = [20, 0], sizes = [4, 32], strides = [1, 1]} : vector<32x32xf32> to vector<4x32xf32>
    %181 = arith.mulf %172, %165 : vector<4x32xf32>
    %182 = arith.addf %180, %181 : vector<4x32xf32>
    %183 = math.tanh %182 : vector<4x32xf32>
    %cst_59 = arith.constant 1.000000e+00 : f32
    %184 = vector.broadcast %cst_59 : f32 to vector<4x32xf32>
    %185 = arith.subf %184, %179 : vector<4x32xf32>
    %186 = arith.mulf %185, %183 : vector<4x32xf32>
    %187 = arith.mulf %179, %160 : vector<4x32xf32>
    %188 = arith.addf %186, %187 : vector<4x32xf32>
    %cst_60 = arith.constant dense<0.000000e+00> : vector<4x32xf32>
    %189 = tpu.matmul %188, %4, %cst_60 {dimension_numbers = #tpu.dot_dimension_numbers<[1], [0], [0], [1], [0, 0, 1, 1], [], []>} : vector<4x32xf32>, vector<32x32xf32>, vector<4x32xf32> -> vector<4x32xf32>
    %cst_61 = arith.constant dense<0.000000e+00> : vector<4x32xf32>
    %190 = tpu.matmul %188, %5, %cst_61 {dimension_numbers = #tpu.dot_dimension_numbers<[1], [0], [0], [1], [0, 0, 1, 1], [], []>} : vector<4x32xf32>, vector<32x32xf32>, vector<4x32xf32> -> vector<4x32xf32>
    %cst_62 = arith.constant dense<0.000000e+00> : vector<4x32xf32>
    %191 = tpu.matmul %188, %6, %cst_62 {dimension_numbers = #tpu.dot_dimension_numbers<[1], [0], [0], [1], [0, 0, 1, 1], [], []>} : vector<4x32xf32>, vector<32x32xf32>, vector<4x32xf32> -> vector<4x32xf32>
    %192 = vector.broadcast %10 : vector<1x32xf32> to vector<4x32xf32>
    %193 = arith.addf %191, %192 : vector<4x32xf32>
    %194 = vector.extract_strided_slice %13 {offsets = [24, 0], sizes = [4, 32], strides = [1, 1]} : vector<32x32xf32> to vector<4x32xf32>
    %195 = arith.addf %194, %189 : vector<4x32xf32>
    %196 = arith.negf %195 : vector<4x32xf32>
    %197 = math.exp %196 : vector<4x32xf32>
    %cst_63 = arith.constant 1.000000e+00 : f32
    %198 = vector.broadcast %cst_63 : f32 to vector<4x32xf32>
    %199 = arith.addf %198, %197 : vector<4x32xf32>
    %200 = arith.divf %198, %199 : vector<4x32xf32>
    %201 = vector.extract_strided_slice %16 {offsets = [24, 0], sizes = [4, 32], strides = [1, 1]} : vector<32x32xf32> to vector<4x32xf32>
    %202 = arith.addf %201, %190 : vector<4x32xf32>
    %203 = arith.negf %202 : vector<4x32xf32>
    %204 = math.exp %203 : vector<4x32xf32>
    %cst_64 = arith.constant 1.000000e+00 : f32
    %205 = vector.broadcast %cst_64 : f32 to vector<4x32xf32>
    %206 = arith.addf %205, %204 : vector<4x32xf32>
    %207 = arith.divf %205, %206 : vector<4x32xf32>
    %208 = vector.extract_strided_slice %19 {offsets = [24, 0], sizes = [4, 32], strides = [1, 1]} : vector<32x32xf32> to vector<4x32xf32>
    %209 = arith.mulf %200, %193 : vector<4x32xf32>
    %210 = arith.addf %208, %209 : vector<4x32xf32>
    %211 = math.tanh %210 : vector<4x32xf32>
    %cst_65 = arith.constant 1.000000e+00 : f32
    %212 = vector.broadcast %cst_65 : f32 to vector<4x32xf32>
    %213 = arith.subf %212, %207 : vector<4x32xf32>
    %214 = arith.mulf %213, %211 : vector<4x32xf32>
    %215 = arith.mulf %207, %188 : vector<4x32xf32>
    %216 = arith.addf %214, %215 : vector<4x32xf32>
    %cst_66 = arith.constant dense<0.000000e+00> : vector<4x32xf32>
    %217 = tpu.matmul %216, %4, %cst_66 {dimension_numbers = #tpu.dot_dimension_numbers<[1], [0], [0], [1], [0, 0, 1, 1], [], []>} : vector<4x32xf32>, vector<32x32xf32>, vector<4x32xf32> -> vector<4x32xf32>
    %cst_67 = arith.constant dense<0.000000e+00> : vector<4x32xf32>
    %218 = tpu.matmul %216, %5, %cst_67 {dimension_numbers = #tpu.dot_dimension_numbers<[1], [0], [0], [1], [0, 0, 1, 1], [], []>} : vector<4x32xf32>, vector<32x32xf32>, vector<4x32xf32> -> vector<4x32xf32>
    %cst_68 = arith.constant dense<0.000000e+00> : vector<4x32xf32>
    %219 = tpu.matmul %216, %6, %cst_68 {dimension_numbers = #tpu.dot_dimension_numbers<[1], [0], [0], [1], [0, 0, 1, 1], [], []>} : vector<4x32xf32>, vector<32x32xf32>, vector<4x32xf32> -> vector<4x32xf32>
    %220 = vector.broadcast %10 : vector<1x32xf32> to vector<4x32xf32>
    %221 = arith.addf %219, %220 : vector<4x32xf32>
    %222 = vector.extract_strided_slice %13 {offsets = [28, 0], sizes = [4, 32], strides = [1, 1]} : vector<32x32xf32> to vector<4x32xf32>
    %223 = arith.addf %222, %217 : vector<4x32xf32>
    %224 = arith.negf %223 : vector<4x32xf32>
    %225 = math.exp %224 : vector<4x32xf32>
    %cst_69 = arith.constant 1.000000e+00 : f32
    %226 = vector.broadcast %cst_69 : f32 to vector<4x32xf32>
    %227 = arith.addf %226, %225 : vector<4x32xf32>
    %228 = arith.divf %226, %227 : vector<4x32xf32>
    %229 = vector.extract_strided_slice %16 {offsets = [28, 0], sizes = [4, 32], strides = [1, 1]} : vector<32x32xf32> to vector<4x32xf32>
    %230 = arith.addf %229, %218 : vector<4x32xf32>
    %231 = arith.negf %230 : vector<4x32xf32>
    %232 = math.exp %231 : vector<4x32xf32>
    %cst_70 = arith.constant 1.000000e+00 : f32
    %233 = vector.broadcast %cst_70 : f32 to vector<4x32xf32>
    %234 = arith.addf %233, %232 : vector<4x32xf32>
    %235 = arith.divf %233, %234 : vector<4x32xf32>
    %236 = vector.extract_strided_slice %19 {offsets = [28, 0], sizes = [4, 32], strides = [1, 1]} : vector<32x32xf32> to vector<4x32xf32>
    %237 = arith.mulf %228, %221 : vector<4x32xf32>
    %238 = arith.addf %236, %237 : vector<4x32xf32>
    %239 = math.tanh %238 : vector<4x32xf32>
    %cst_71 = arith.constant 1.000000e+00 : f32
    %240 = vector.broadcast %cst_71 : f32 to vector<4x32xf32>
    %241 = arith.subf %240, %235 : vector<4x32xf32>
    %242 = arith.mulf %241, %239 : vector<4x32xf32>
    %243 = arith.mulf %235, %216 : vector<4x32xf32>
    %244 = arith.addf %242, %243 : vector<4x32xf32>
    %c0_72 = arith.constant 0 : index
    %c0_73 = arith.constant 0 : index
    %c0_74 = arith.constant 0 : index
    %245 = vector.load %arg24[%c0_72, %c0_73, %c0_74] : memref<2x4x32xf32, #tpu.memory_space<vmem>>, vector<1x4x32xf32>
    %246 = vector.shape_cast %245 : vector<1x4x32xf32> to vector<4x32xf32>
    %247 = vector.shape_cast %244 : vector<4x32xf32> to vector<1x4x32xf32>
    tpu.vector_store %arg24[%c0_72, %c0_73, %c0_74], %247 {strides = array<i32>} : memref<2x4x32xf32, #tpu.memory_space<vmem>>, vector<1x4x32xf32>,
    %248 = tpu.concatenate %48, %76, %104, %132, %160, %188, %216, %244 in 0 : vector<4x32xf32>, vector<4x32xf32>, vector<4x32xf32>, vector<4x32xf32>, vector<4x32xf32>, vector<4x32xf32>, vector<4x32xf32>, vector<4x32xf32> -> vector<32x32xf32>
    %c0_75 = arith.constant 0 : index
    %c0_76 = arith.constant 0 : index
    %249 = vector.load %arg11[%c0_75, %c0_76] : memref<32x32xf32, #tpu.memory_space<vmem>>, vector<32x32xf32>
    %c0_77 = arith.constant 0 : index
    %c0_78 = arith.constant 0 : index
    %250 = vector.load %arg12[%c0_77, %c0_78] : memref<32x32xf32, #tpu.memory_space<vmem>>, vector<32x32xf32>
    %c0_79 = arith.constant 0 : index
    %c0_80 = arith.constant 0 : index
    %251 = vector.load %arg13[%c0_79, %c0_80] : memref<32x32xf32, #tpu.memory_space<vmem>>, vector<32x32xf32>
    %c0_81 = arith.constant 0 : index
    %c0_82 = arith.constant 0 : index
    %252 = vector.load %arg14[%c0_81, %c0_82] : memref<32x32xf32, #tpu.memory_space<vmem>>, vector<32x32xf32>
    %c0_83 = arith.constant 0 : index
    %c0_84 = arith.constant 0 : index
    %253 = vector.load %arg15[%c0_83, %c0_84] : memref<32x32xf32, #tpu.memory_space<vmem>>, vector<32x32xf32>
    %c0_85 = arith.constant 0 : index
    %c0_86 = arith.constant 0 : index
    %254 = vector.load %arg16[%c0_85, %c0_86] : memref<32x32xf32, #tpu.memory_space<vmem>>, vector<32x32xf32>
    %c0_87 = arith.constant 0 : index
    %c0_88 = arith.constant 0 : index
    %255 = vector.load %arg17[%c0_87, %c0_88] : memref<1x32xf32, #tpu.memory_space<vmem>>, vector<1x32xf32>
    %c0_89 = arith.constant 0 : index
    %c0_90 = arith.constant 0 : index
    %256 = vector.load %arg18[%c0_89, %c0_90] : memref<1x32xf32, #tpu.memory_space<vmem>>, vector<1x32xf32>
    %c0_91 = arith.constant 0 : index
    %c0_92 = arith.constant 0 : index
    %257 = vector.load %arg19[%c0_91, %c0_92] : memref<1x32xf32, #tpu.memory_space<vmem>>, vector<1x32xf32>
    %c0_93 = arith.constant 0 : index
    %c0_94 = arith.constant 0 : index
    %258 = vector.load %arg20[%c0_93, %c0_94] : memref<1x32xf32, #tpu.memory_space<vmem>>, vector<1x32xf32>
    %cst_95 = arith.constant dense<0.000000e+00> : vector<32x32xf32>
    %259 = tpu.matmul %248, %249, %cst_95 {dimension_numbers = #tpu.dot_dimension_numbers<[1], [0], [0], [1], [0, 0, 1, 1], [], []>} : vector<32x32xf32>, vector<32x32xf32>, vector<32x32xf32> -> vector<32x32xf32>
    %260 = vector.broadcast %255 : vector<1x32xf32> to vector<32x32xf32>
    %261 = arith.addf %259, %260 : vector<32x32xf32>
    %cst_96 = arith.constant dense<0.000000e+00> : vector<32x32xf32>
    %262 = tpu.matmul %248, %250, %cst_96 {dimension_numbers = #tpu.dot_dimension_numbers<[1], [0], [0], [1], [0, 0, 1, 1], [], []>} : vector<32x32xf32>, vector<32x32xf32>, vector<32x32xf32> -> vector<32x32xf32>
    %263 = vector.broadcast %256 : vector<1x32xf32> to vector<32x32xf32>
    %264 = arith.addf %262, %263 : vector<32x32xf32>
    %cst_97 = arith.constant dense<0.000000e+00> : vector<32x32xf32>
    %265 = tpu.matmul %248, %251, %cst_97 {dimension_numbers = #tpu.dot_dimension_numbers<[1], [0], [0], [1], [0, 0, 1, 1], [], []>} : vector<32x32xf32>, vector<32x32xf32>, vector<32x32xf32> -> vector<32x32xf32>
    %266 = vector.broadcast %257 : vector<1x32xf32> to vector<32x32xf32>
    %267 = arith.addf %265, %266 : vector<32x32xf32>
    %cst_98 = arith.constant 0.000000e+00 : f32
    %268 = vector.broadcast %cst_98 : f32 to vector<4x32xf32>
    %cst_99 = arith.constant dense<0.000000e+00> : vector<4x32xf32>
    %269 = tpu.matmul %268, %252, %cst_99 {dimension_numbers = #tpu.dot_dimension_numbers<[1], [0], [0], [1], [0, 0, 1, 1], [], []>} : vector<4x32xf32>, vector<32x32xf32>, vector<4x32xf32> -> vector<4x32xf32>
    %cst_100 = arith.constant dense<0.000000e+00> : vector<4x32xf32>
    %270 = tpu.matmul %268, %253, %cst_100 {dimension_numbers = #tpu.dot_dimension_numbers<[1], [0], [0], [1], [0, 0, 1, 1], [], []>} : vector<4x32xf32>, vector<32x32xf32>, vector<4x32xf32> -> vector<4x32xf32>
    %cst_101 = arith.constant dense<0.000000e+00> : vector<4x32xf32>
    %271 = tpu.matmul %268, %254, %cst_101 {dimension_numbers = #tpu.dot_dimension_numbers<[1], [0], [0], [1], [0, 0, 1, 1], [], []>} : vector<4x32xf32>, vector<32x32xf32>, vector<4x32xf32> -> vector<4x32xf32>
    %272 = vector.broadcast %258 : vector<1x32xf32> to vector<4x32xf32>
    %273 = arith.addf %271, %272 : vector<4x32xf32>
    %274 = vector.extract_strided_slice %261 {offsets = [0, 0], sizes = [4, 32], strides = [1, 1]} : vector<32x32xf32> to vector<4x32xf32>
    %275 = arith.addf %274, %269 : vector<4x32xf32>
    %276 = arith.negf %275 : vector<4x32xf32>
    %277 = math.exp %276 : vector<4x32xf32>
    %cst_102 = arith.constant 1.000000e+00 : f32
    %278 = vector.broadcast %cst_102 : f32 to vector<4x32xf32>
    %279 = arith.addf %278, %277 : vector<4x32xf32>
    %280 = arith.divf %278, %279 : vector<4x32xf32>
    %281 = vector.extract_strided_slice %264 {offsets = [0, 0], sizes = [4, 32], strides = [1, 1]} : vector<32x32xf32> to vector<4x32xf32>
    %282 = arith.addf %281, %270 : vector<4x32xf32>
    %283 = arith.negf %282 : vector<4x32xf32>
    %284 = math.exp %283 : vector<4x32xf32>
    %cst_103 = arith.constant 1.000000e+00 : f32
    %285 = vector.broadcast %cst_103 : f32 to vector<4x32xf32>
    %286 = arith.addf %285, %284 : vector<4x32xf32>
    %287 = arith.divf %285, %286 : vector<4x32xf32>
    %288 = vector.extract_strided_slice %267 {offsets = [0, 0], sizes = [4, 32], strides = [1, 1]} : vector<32x32xf32> to vector<4x32xf32>
    %289 = arith.mulf %280, %273 : vector<4x32xf32>
    %290 = arith.addf %288, %289 : vector<4x32xf32>
    %291 = math.tanh %290 : vector<4x32xf32>
    %cst_104 = arith.constant 1.000000e+00 : f32
    %292 = vector.broadcast %cst_104 : f32 to vector<4x32xf32>
    %293 = arith.subf %292, %287 : vector<4x32xf32>
    %294 = arith.mulf %293, %291 : vector<4x32xf32>
    %295 = arith.mulf %287, %268 : vector<4x32xf32>
    %296 = arith.addf %294, %295 : vector<4x32xf32>
    %cst_105 = arith.constant dense<0.000000e+00> : vector<4x32xf32>
    %297 = tpu.matmul %296, %252, %cst_105 {dimension_numbers = #tpu.dot_dimension_numbers<[1], [0], [0], [1], [0, 0, 1, 1], [], []>} : vector<4x32xf32>, vector<32x32xf32>, vector<4x32xf32> -> vector<4x32xf32>
    %cst_106 = arith.constant dense<0.000000e+00> : vector<4x32xf32>
    %298 = tpu.matmul %296, %253, %cst_106 {dimension_numbers = #tpu.dot_dimension_numbers<[1], [0], [0], [1], [0, 0, 1, 1], [], []>} : vector<4x32xf32>, vector<32x32xf32>, vector<4x32xf32> -> vector<4x32xf32>
    %cst_107 = arith.constant dense<0.000000e+00> : vector<4x32xf32>
    %299 = tpu.matmul %296, %254, %cst_107 {dimension_numbers = #tpu.dot_dimension_numbers<[1], [0], [0], [1], [0, 0, 1, 1], [], []>} : vector<4x32xf32>, vector<32x32xf32>, vector<4x32xf32> -> vector<4x32xf32>
    %300 = vector.broadcast %258 : vector<1x32xf32> to vector<4x32xf32>
    %301 = arith.addf %299, %300 : vector<4x32xf32>
    %302 = vector.extract_strided_slice %261 {offsets = [4, 0], sizes = [4, 32], strides = [1, 1]} : vector<32x32xf32> to vector<4x32xf32>
    %303 = arith.addf %302, %297 : vector<4x32xf32>
    %304 = arith.negf %303 : vector<4x32xf32>
    %305 = math.exp %304 : vector<4x32xf32>
    %cst_108 = arith.constant 1.000000e+00 : f32
    %306 = vector.broadcast %cst_108 : f32 to vector<4x32xf32>
    %307 = arith.addf %306, %305 : vector<4x32xf32>
    %308 = arith.divf %306, %307 : vector<4x32xf32>
    %309 = vector.extract_strided_slice %264 {offsets = [4, 0], sizes = [4, 32], strides = [1, 1]} : vector<32x32xf32> to vector<4x32xf32>
    %310 = arith.addf %309, %298 : vector<4x32xf32>
    %311 = arith.negf %310 : vector<4x32xf32>
    %312 = math.exp %311 : vector<4x32xf32>
    %cst_109 = arith.constant 1.000000e+00 : f32
    %313 = vector.broadcast %cst_109 : f32 to vector<4x32xf32>
    %314 = arith.addf %313, %312 : vector<4x32xf32>
    %315 = arith.divf %313, %314 : vector<4x32xf32>
    %316 = vector.extract_strided_slice %267 {offsets = [4, 0], sizes = [4, 32], strides = [1, 1]} : vector<32x32xf32> to vector<4x32xf32>
    %317 = arith.mulf %308, %301 : vector<4x32xf32>
    %318 = arith.addf %316, %317 : vector<4x32xf32>
    %319 = math.tanh %318 : vector<4x32xf32>
    %cst_110 = arith.constant 1.000000e+00 : f32
    %320 = vector.broadcast %cst_110 : f32 to vector<4x32xf32>
    %321 = arith.subf %320, %315 : vector<4x32xf32>
    %322 = arith.mulf %321, %319 : vector<4x32xf32>
    %323 = arith.mulf %315, %296 : vector<4x32xf32>
    %324 = arith.addf %322, %323 : vector<4x32xf32>
    %cst_111 = arith.constant dense<0.000000e+00> : vector<4x32xf32>
    %325 = tpu.matmul %324, %252, %cst_111 {dimension_numbers = #tpu.dot_dimension_numbers<[1], [0], [0], [1], [0, 0, 1, 1], [], []>} : vector<4x32xf32>, vector<32x32xf32>, vector<4x32xf32> -> vector<4x32xf32>
    %cst_112 = arith.constant dense<0.000000e+00> : vector<4x32xf32>
    %326 = tpu.matmul %324, %253, %cst_112 {dimension_numbers = #tpu.dot_dimension_numbers<[1], [0], [0], [1], [0, 0, 1, 1], [], []>} : vector<4x32xf32>, vector<32x32xf32>, vector<4x32xf32> -> vector<4x32xf32>
    %cst_113 = arith.constant dense<0.000000e+00> : vector<4x32xf32>
    %327 = tpu.matmul %324, %254, %cst_113 {dimension_numbers = #tpu.dot_dimension_numbers<[1], [0], [0], [1], [0, 0, 1, 1], [], []>} : vector<4x32xf32>, vector<32x32xf32>, vector<4x32xf32> -> vector<4x32xf32>
    %328 = vector.broadcast %258 : vector<1x32xf32> to vector<4x32xf32>
    %329 = arith.addf %327, %328 : vector<4x32xf32>
    %330 = vector.extract_strided_slice %261 {offsets = [8, 0], sizes = [4, 32], strides = [1, 1]} : vector<32x32xf32> to vector<4x32xf32>
    %331 = arith.addf %330, %325 : vector<4x32xf32>
    %332 = arith.negf %331 : vector<4x32xf32>
    %333 = math.exp %332 : vector<4x32xf32>
    %cst_114 = arith.constant 1.000000e+00 : f32
    %334 = vector.broadcast %cst_114 : f32 to vector<4x32xf32>
    %335 = arith.addf %334, %333 : vector<4x32xf32>
    %336 = arith.divf %334, %335 : vector<4x32xf32>
    %337 = vector.extract_strided_slice %264 {offsets = [8, 0], sizes = [4, 32], strides = [1, 1]} : vector<32x32xf32> to vector<4x32xf32>
    %338 = arith.addf %337, %326 : vector<4x32xf32>
    %339 = arith.negf %338 : vector<4x32xf32>
    %340 = math.exp %339 : vector<4x32xf32>
    %cst_115 = arith.constant 1.000000e+00 : f32
    %341 = vector.broadcast %cst_115 : f32 to vector<4x32xf32>
    %342 = arith.addf %341, %340 : vector<4x32xf32>
    %343 = arith.divf %341, %342 : vector<4x32xf32>
    %344 = vector.extract_strided_slice %267 {offsets = [8, 0], sizes = [4, 32], strides = [1, 1]} : vector<32x32xf32> to vector<4x32xf32>
    %345 = arith.mulf %336, %329 : vector<4x32xf32>
    %346 = arith.addf %344, %345 : vector<4x32xf32>
    %347 = math.tanh %346 : vector<4x32xf32>
    %cst_116 = arith.constant 1.000000e+00 : f32
    %348 = vector.broadcast %cst_116 : f32 to vector<4x32xf32>
    %349 = arith.subf %348, %343 : vector<4x32xf32>
    %350 = arith.mulf %349, %347 : vector<4x32xf32>
    %351 = arith.mulf %343, %324 : vector<4x32xf32>
    %352 = arith.addf %350, %351 : vector<4x32xf32>
    %cst_117 = arith.constant dense<0.000000e+00> : vector<4x32xf32>
    %353 = tpu.matmul %352, %252, %cst_117 {dimension_numbers = #tpu.dot_dimension_numbers<[1], [0], [0], [1], [0, 0, 1, 1], [], []>} : vector<4x32xf32>, vector<32x32xf32>, vector<4x32xf32> -> vector<4x32xf32>
    %cst_118 = arith.constant dense<0.000000e+00> : vector<4x32xf32>
    %354 = tpu.matmul %352, %253, %cst_118 {dimension_numbers = #tpu.dot_dimension_numbers<[1], [0], [0], [1], [0, 0, 1, 1], [], []>} : vector<4x32xf32>, vector<32x32xf32>, vector<4x32xf32> -> vector<4x32xf32>
    %cst_119 = arith.constant dense<0.000000e+00> : vector<4x32xf32>
    %355 = tpu.matmul %352, %254, %cst_119 {dimension_numbers = #tpu.dot_dimension_numbers<[1], [0], [0], [1], [0, 0, 1, 1], [], []>} : vector<4x32xf32>, vector<32x32xf32>, vector<4x32xf32> -> vector<4x32xf32>
    %356 = vector.broadcast %258 : vector<1x32xf32> to vector<4x32xf32>
    %357 = arith.addf %355, %356 : vector<4x32xf32>
    %358 = vector.extract_strided_slice %261 {offsets = [12, 0], sizes = [4, 32], strides = [1, 1]} : vector<32x32xf32> to vector<4x32xf32>
    %359 = arith.addf %358, %353 : vector<4x32xf32>
    %360 = arith.negf %359 : vector<4x32xf32>
    %361 = math.exp %360 : vector<4x32xf32>
    %cst_120 = arith.constant 1.000000e+00 : f32
    %362 = vector.broadcast %cst_120 : f32 to vector<4x32xf32>
    %363 = arith.addf %362, %361 : vector<4x32xf32>
    %364 = arith.divf %362, %363 : vector<4x32xf32>
    %365 = vector.extract_strided_slice %264 {offsets = [12, 0], sizes = [4, 32], strides = [1, 1]} : vector<32x32xf32> to vector<4x32xf32>
    %366 = arith.addf %365, %354 : vector<4x32xf32>
    %367 = arith.negf %366 : vector<4x32xf32>
    %368 = math.exp %367 : vector<4x32xf32>
    %cst_121 = arith.constant 1.000000e+00 : f32
    %369 = vector.broadcast %cst_121 : f32 to vector<4x32xf32>
    %370 = arith.addf %369, %368 : vector<4x32xf32>
    %371 = arith.divf %369, %370 : vector<4x32xf32>
    %372 = vector.extract_strided_slice %267 {offsets = [12, 0], sizes = [4, 32], strides = [1, 1]} : vector<32x32xf32> to vector<4x32xf32>
    %373 = arith.mulf %364, %357 : vector<4x32xf32>
    %374 = arith.addf %372, %373 : vector<4x32xf32>
    %375 = math.tanh %374 : vector<4x32xf32>
    %cst_122 = arith.constant 1.000000e+00 : f32
    %376 = vector.broadcast %cst_122 : f32 to vector<4x32xf32>
    %377 = arith.subf %376, %371 : vector<4x32xf32>
    %378 = arith.mulf %377, %375 : vector<4x32xf32>
    %379 = arith.mulf %371, %352 : vector<4x32xf32>
    %380 = arith.addf %378, %379 : vector<4x32xf32>
    %cst_123 = arith.constant dense<0.000000e+00> : vector<4x32xf32>
    %381 = tpu.matmul %380, %252, %cst_123 {dimension_numbers = #tpu.dot_dimension_numbers<[1], [0], [0], [1], [0, 0, 1, 1], [], []>} : vector<4x32xf32>, vector<32x32xf32>, vector<4x32xf32> -> vector<4x32xf32>
    %cst_124 = arith.constant dense<0.000000e+00> : vector<4x32xf32>
    %382 = tpu.matmul %380, %253, %cst_124 {dimension_numbers = #tpu.dot_dimension_numbers<[1], [0], [0], [1], [0, 0, 1, 1], [], []>} : vector<4x32xf32>, vector<32x32xf32>, vector<4x32xf32> -> vector<4x32xf32>
    %cst_125 = arith.constant dense<0.000000e+00> : vector<4x32xf32>
    %383 = tpu.matmul %380, %254, %cst_125 {dimension_numbers = #tpu.dot_dimension_numbers<[1], [0], [0], [1], [0, 0, 1, 1], [], []>} : vector<4x32xf32>, vector<32x32xf32>, vector<4x32xf32> -> vector<4x32xf32>
    %384 = vector.broadcast %258 : vector<1x32xf32> to vector<4x32xf32>
    %385 = arith.addf %383, %384 : vector<4x32xf32>
    %386 = vector.extract_strided_slice %261 {offsets = [16, 0], sizes = [4, 32], strides = [1, 1]} : vector<32x32xf32> to vector<4x32xf32>
    %387 = arith.addf %386, %381 : vector<4x32xf32>
    %388 = arith.negf %387 : vector<4x32xf32>
    %389 = math.exp %388 : vector<4x32xf32>
    %cst_126 = arith.constant 1.000000e+00 : f32
    %390 = vector.broadcast %cst_126 : f32 to vector<4x32xf32>
    %391 = arith.addf %390, %389 : vector<4x32xf32>
    %392 = arith.divf %390, %391 : vector<4x32xf32>
    %393 = vector.extract_strided_slice %264 {offsets = [16, 0], sizes = [4, 32], strides = [1, 1]} : vector<32x32xf32> to vector<4x32xf32>
    %394 = arith.addf %393, %382 : vector<4x32xf32>
    %395 = arith.negf %394 : vector<4x32xf32>
    %396 = math.exp %395 : vector<4x32xf32>
    %cst_127 = arith.constant 1.000000e+00 : f32
    %397 = vector.broadcast %cst_127 : f32 to vector<4x32xf32>
    %398 = arith.addf %397, %396 : vector<4x32xf32>
    %399 = arith.divf %397, %398 : vector<4x32xf32>
    %400 = vector.extract_strided_slice %267 {offsets = [16, 0], sizes = [4, 32], strides = [1, 1]} : vector<32x32xf32> to vector<4x32xf32>
    %401 = arith.mulf %392, %385 : vector<4x32xf32>
    %402 = arith.addf %400, %401 : vector<4x32xf32>
    %403 = math.tanh %402 : vector<4x32xf32>
    %cst_128 = arith.constant 1.000000e+00 : f32
    %404 = vector.broadcast %cst_128 : f32 to vector<4x32xf32>
    %405 = arith.subf %404, %399 : vector<4x32xf32>
    %406 = arith.mulf %405, %403 : vector<4x32xf32>
    %407 = arith.mulf %399, %380 : vector<4x32xf32>
    %408 = arith.addf %406, %407 : vector<4x32xf32>
    %cst_129 = arith.constant dense<0.000000e+00> : vector<4x32xf32>
    %409 = tpu.matmul %408, %252, %cst_129 {dimension_numbers = #tpu.dot_dimension_numbers<[1], [0], [0], [1], [0, 0, 1, 1], [], []>} : vector<4x32xf32>, vector<32x32xf32>, vector<4x32xf32> -> vector<4x32xf32>
    %cst_130 = arith.constant dense<0.000000e+00> : vector<4x32xf32>
    %410 = tpu.matmul %408, %253, %cst_130 {dimension_numbers = #tpu.dot_dimension_numbers<[1], [0], [0], [1], [0, 0, 1, 1], [], []>} : vector<4x32xf32>, vector<32x32xf32>, vector<4x32xf32> -> vector<4x32xf32>
    %cst_131 = arith.constant dense<0.000000e+00> : vector<4x32xf32>
    %411 = tpu.matmul %408, %254, %cst_131 {dimension_numbers = #tpu.dot_dimension_numbers<[1], [0], [0], [1], [0, 0, 1, 1], [], []>} : vector<4x32xf32>, vector<32x32xf32>, vector<4x32xf32> -> vector<4x32xf32>
    %412 = vector.broadcast %258 : vector<1x32xf32> to vector<4x32xf32>
    %413 = arith.addf %411, %412 : vector<4x32xf32>
    %414 = vector.extract_strided_slice %261 {offsets = [20, 0], sizes = [4, 32], strides = [1, 1]} : vector<32x32xf32> to vector<4x32xf32>
    %415 = arith.addf %414, %409 : vector<4x32xf32>
    %416 = arith.negf %415 : vector<4x32xf32>
    %417 = math.exp %416 : vector<4x32xf32>
    %cst_132 = arith.constant 1.000000e+00 : f32
    %418 = vector.broadcast %cst_132 : f32 to vector<4x32xf32>
    %419 = arith.addf %418, %417 : vector<4x32xf32>
    %420 = arith.divf %418, %419 : vector<4x32xf32>
    %421 = vector.extract_strided_slice %264 {offsets = [20, 0], sizes = [4, 32], strides = [1, 1]} : vector<32x32xf32> to vector<4x32xf32>
    %422 = arith.addf %421, %410 : vector<4x32xf32>
    %423 = arith.negf %422 : vector<4x32xf32>
    %424 = math.exp %423 : vector<4x32xf32>
    %cst_133 = arith.constant 1.000000e+00 : f32
    %425 = vector.broadcast %cst_133 : f32 to vector<4x32xf32>
    %426 = arith.addf %425, %424 : vector<4x32xf32>
    %427 = arith.divf %425, %426 : vector<4x32xf32>
    %428 = vector.extract_strided_slice %267 {offsets = [20, 0], sizes = [4, 32], strides = [1, 1]} : vector<32x32xf32> to vector<4x32xf32>
    %429 = arith.mulf %420, %413 : vector<4x32xf32>
    %430 = arith.addf %428, %429 : vector<4x32xf32>
    %431 = math.tanh %430 : vector<4x32xf32>
    %cst_134 = arith.constant 1.000000e+00 : f32
    %432 = vector.broadcast %cst_134 : f32 to vector<4x32xf32>
    %433 = arith.subf %432, %427 : vector<4x32xf32>
    %434 = arith.mulf %433, %431 : vector<4x32xf32>
    %435 = arith.mulf %427, %408 : vector<4x32xf32>
    %436 = arith.addf %434, %435 : vector<4x32xf32>
    %cst_135 = arith.constant dense<0.000000e+00> : vector<4x32xf32>
    %437 = tpu.matmul %436, %252, %cst_135 {dimension_numbers = #tpu.dot_dimension_numbers<[1], [0], [0], [1], [0, 0, 1, 1], [], []>} : vector<4x32xf32>, vector<32x32xf32>, vector<4x32xf32> -> vector<4x32xf32>
    %cst_136 = arith.constant dense<0.000000e+00> : vector<4x32xf32>
    %438 = tpu.matmul %436, %253, %cst_136 {dimension_numbers = #tpu.dot_dimension_numbers<[1], [0], [0], [1], [0, 0, 1, 1], [], []>} : vector<4x32xf32>, vector<32x32xf32>, vector<4x32xf32> -> vector<4x32xf32>
    %cst_137 = arith.constant dense<0.000000e+00> : vector<4x32xf32>
    %439 = tpu.matmul %436, %254, %cst_137 {dimension_numbers = #tpu.dot_dimension_numbers<[1], [0], [0], [1], [0, 0, 1, 1], [], []>} : vector<4x32xf32>, vector<32x32xf32>, vector<4x32xf32> -> vector<4x32xf32>
    %440 = vector.broadcast %258 : vector<1x32xf32> to vector<4x32xf32>
    %441 = arith.addf %439, %440 : vector<4x32xf32>
    %442 = vector.extract_strided_slice %261 {offsets = [24, 0], sizes = [4, 32], strides = [1, 1]} : vector<32x32xf32> to vector<4x32xf32>
    %443 = arith.addf %442, %437 : vector<4x32xf32>
    %444 = arith.negf %443 : vector<4x32xf32>
    %445 = math.exp %444 : vector<4x32xf32>
    %cst_138 = arith.constant 1.000000e+00 : f32
    %446 = vector.broadcast %cst_138 : f32 to vector<4x32xf32>
    %447 = arith.addf %446, %445 : vector<4x32xf32>
    %448 = arith.divf %446, %447 : vector<4x32xf32>
    %449 = vector.extract_strided_slice %264 {offsets = [24, 0], sizes = [4, 32], strides = [1, 1]} : vector<32x32xf32> to vector<4x32xf32>
    %450 = arith.addf %449, %438 : vector<4x32xf32>
    %451 = arith.negf %450 : vector<4x32xf32>
    %452 = math.exp %451 : vector<4x32xf32>
    %cst_139 = arith.constant 1.000000e+00 : f32
    %453 = vector.broadcast %cst_139 : f32 to vector<4x32xf32>
    %454 = arith.addf %453, %452 : vector<4x32xf32>
    %455 = arith.divf %453, %454 : vector<4x32xf32>
    %456 = vector.extract_strided_slice %267 {offsets = [24, 0], sizes = [4, 32], strides = [1, 1]} : vector<32x32xf32> to vector<4x32xf32>
    %457 = arith.mulf %448, %441 : vector<4x32xf32>
    %458 = arith.addf %456, %457 : vector<4x32xf32>
    %459 = math.tanh %458 : vector<4x32xf32>
    %cst_140 = arith.constant 1.000000e+00 : f32
    %460 = vector.broadcast %cst_140 : f32 to vector<4x32xf32>
    %461 = arith.subf %460, %455 : vector<4x32xf32>
    %462 = arith.mulf %461, %459 : vector<4x32xf32>
    %463 = arith.mulf %455, %436 : vector<4x32xf32>
    %464 = arith.addf %462, %463 : vector<4x32xf32>
    %cst_141 = arith.constant dense<0.000000e+00> : vector<4x32xf32>
    %465 = tpu.matmul %464, %252, %cst_141 {dimension_numbers = #tpu.dot_dimension_numbers<[1], [0], [0], [1], [0, 0, 1, 1], [], []>} : vector<4x32xf32>, vector<32x32xf32>, vector<4x32xf32> -> vector<4x32xf32>
    %cst_142 = arith.constant dense<0.000000e+00> : vector<4x32xf32>
    %466 = tpu.matmul %464, %253, %cst_142 {dimension_numbers = #tpu.dot_dimension_numbers<[1], [0], [0], [1], [0, 0, 1, 1], [], []>} : vector<4x32xf32>, vector<32x32xf32>, vector<4x32xf32> -> vector<4x32xf32>
    %cst_143 = arith.constant dense<0.000000e+00> : vector<4x32xf32>
    %467 = tpu.matmul %464, %254, %cst_143 {dimension_numbers = #tpu.dot_dimension_numbers<[1], [0], [0], [1], [0, 0, 1, 1], [], []>} : vector<4x32xf32>, vector<32x32xf32>, vector<4x32xf32> -> vector<4x32xf32>
    %468 = vector.broadcast %258 : vector<1x32xf32> to vector<4x32xf32>
    %469 = arith.addf %467, %468 : vector<4x32xf32>
    %470 = vector.extract_strided_slice %261 {offsets = [28, 0], sizes = [4, 32], strides = [1, 1]} : vector<32x32xf32> to vector<4x32xf32>
    %471 = arith.addf %470, %465 : vector<4x32xf32>
    %472 = arith.negf %471 : vector<4x32xf32>
    %473 = math.exp %472 : vector<4x32xf32>
    %cst_144 = arith.constant 1.000000e+00 : f32
    %474 = vector.broadcast %cst_144 : f32 to vector<4x32xf32>
    %475 = arith.addf %474, %473 : vector<4x32xf32>
    %476 = arith.divf %474, %475 : vector<4x32xf32>
    %477 = vector.extract_strided_slice %264 {offsets = [28, 0], sizes = [4, 32], strides = [1, 1]} : vector<32x32xf32> to vector<4x32xf32>
    %478 = arith.addf %477, %466 : vector<4x32xf32>
    %479 = arith.negf %478 : vector<4x32xf32>
    %480 = math.exp %479 : vector<4x32xf32>
    %cst_145 = arith.constant 1.000000e+00 : f32
    %481 = vector.broadcast %cst_145 : f32 to vector<4x32xf32>
    %482 = arith.addf %481, %480 : vector<4x32xf32>
    %483 = arith.divf %481, %482 : vector<4x32xf32>
    %484 = vector.extract_strided_slice %267 {offsets = [28, 0], sizes = [4, 32], strides = [1, 1]} : vector<32x32xf32> to vector<4x32xf32>
    %485 = arith.mulf %476, %469 : vector<4x32xf32>
    %486 = arith.addf %484, %485 : vector<4x32xf32>
    %487 = math.tanh %486 : vector<4x32xf32>
    %cst_146 = arith.constant 1.000000e+00 : f32
    %488 = vector.broadcast %cst_146 : f32 to vector<4x32xf32>
    %489 = arith.subf %488, %483 : vector<4x32xf32>
    %490 = arith.mulf %489, %487 : vector<4x32xf32>
    %491 = arith.mulf %483, %464 : vector<4x32xf32>
    %492 = arith.addf %490, %491 : vector<4x32xf32>
    %c1 = arith.constant 1 : index
    %c0_147 = arith.constant 0 : index
    %c0_148 = arith.constant 0 : index
    %493 = vector.load %arg24[%c1, %c0_147, %c0_148] : memref<2x4x32xf32, #tpu.memory_space<vmem>>, vector<1x4x32xf32>
    %494 = vector.shape_cast %493 : vector<1x4x32xf32> to vector<4x32xf32>
    %495 = vector.shape_cast %492 : vector<4x32xf32> to vector<1x4x32xf32>
    tpu.vector_store %arg24[%c1, %c0_147, %c0_148], %495 {strides = array<i32>} : memref<2x4x32xf32, #tpu.memory_space<vmem>>, vector<1x4x32xf32>,
    %c0_149 = arith.constant 0 : index
    %c0_150 = arith.constant 0 : index
    %496 = vector.load %arg21[%c0_149, %c0_150] : memref<32x8xf32, #tpu.memory_space<vmem>>, vector<32x8xf32>
    %cst_151 = arith.constant dense<0.000000e+00> : vector<4x8xf32>
    %497 = tpu.matmul %244, %496, %cst_151 {dimension_numbers = #tpu.dot_dimension_numbers<[1], [0], [0], [1], [0, 0, 1, 1], [], []>} : vector<4x32xf32>, vector<32x8xf32>, vector<4x8xf32> -> vector<4x8xf32>
    %c0_152 = arith.constant 0 : index
    %c0_153 = arith.constant 0 : index
    %498 = vector.load %arg22[%c0_152, %c0_153] : memref<1x8xf32, #tpu.memory_space<vmem>>, vector<1x8xf32>
    %499 = vector.broadcast %498 : vector<1x8xf32> to vector<4x8xf32>
    %500 = arith.addf %497, %499 : vector<4x8xf32>
    %c0_154 = arith.constant 0 : index
    %c0_155 = arith.constant 0 : index
    %501 = vector.load %arg23[%c0_154, %c0_155] : memref<4x8xf32, #tpu.memory_space<vmem>>, vector<4x8xf32>
    tpu.vector_store %arg23[%c0_154, %c0_155], %500 {strides = array<i32>} : memref<4x8xf32, #tpu.memory_space<vmem>>, vector<4x8xf32>,
    return
  }
}

</mosaic_0001>

<bundles_post_ra>
// kernel: gru_model_forward.1
= control target key start
LH: loop header
LB: loop body
LE: loop exit
PB: predicated region body
PF: predicated region fallthrough
CT: control target
= control target key end

     0   :  { %s7142_s0 = inlined_call_operand.vmem [shape: f32[32,16], index: 0, kind: input, shape index: {}]   ;;  %s7143_s1 = inlined_call_operand.vmem [shape: f32[16,32], index: 1, kind: input, shape index: {}]   ;;  %s7144_s2 = inlined_call_operand.vmem [shape: f32[16,32], index: 2, kind: input, shape index: {}]   ;;  %s7145_s3 = inlined_call_operand.vmem [shape: f32[16,32], index: 3, kind: input, shape index: {}]   ;;  %s7146_s4 = inlined_call_operand.vmem [shape: f32[32,32], index: 4, kind: input, shape index: {}]   ;;  %s7147_s5 = inlined_call_operand.vmem [shape: f32[32,32], index: 5, kind: input, shape index: {}]   ;;  %s7148_s6 = inlined_call_operand.vmem [shape: f32[32,32], index: 6, kind: input, shape index: {}]   ;;  %s7149_s7 = inlined_call_operand.vmem [shape: f32[1,32], index: 7, kind: input, shape index: {}]   ;;  %s7150_s8 = inlined_call_operand.vmem [shape: f32[1,32], index: 8, kind: input, shape index: {}]   ;;  %s7151_s9 = inlined_call_operand.vmem [shape: f32[1,32], index: 9, kind: input, shape index: {}]   ;;  %s7152_s10 = inlined_call_operand.vmem [shape: f32[1,32], index: 10, kind: input, shape index: {}]   ;;  %s7153_s11 = inlined_call_operand.vmem [shape: f32[32,32], index: 11, kind: input, shape index: {}]   ;;  %s7154_s12 = inlined_call_operand.vmem [shape: f32[32,32], index: 12, kind: input, shape index: {}]   ;;  %s7155_s13 = inlined_call_operand.vmem [shape: f32[32,32], index: 13, kind: input, shape index: {}]   ;;  %s7156_s14 = inlined_call_operand.vmem [shape: f32[32,32], index: 14, kind: input, shape index: {}]   ;;  %s7157_s15 = inlined_call_operand.vmem [shape: f32[32,32], index: 15, kind: input, shape index: {}]   ;;  %s7158_s16 = inlined_call_operand.vmem [shape: f32[32,32], index: 16, kind: input, shape index: {}]   ;;  %s7159_s17 = inlined_call_operand.vmem [shape: f32[1,32], index: 17, kind: input, shape index: {}]   ;;  %s7160_s18 = inlined_call_operand.vmem [shape: f32[1,32], index: 18, kind: input, shape index: {}]   ;;  %s7161_s19 = inlined_call_operand.vmem [shape: f32[1,32], index: 19, kind: input, shape index: {}]   ;;  %s7162_s20 = inlined_call_operand.vmem [shape: f32[1,32], index: 20, kind: input, shape index: {}]   ;;  %s7163_s21 = inlined_call_operand.vmem [shape: f32[32,8], index: 21, kind: input, shape index: {}]   ;;  %s7164_s22 = inlined_call_operand.vmem [shape: f32[1,8], index: 22, kind: input, shape index: {}]   ;;  %s7165_s23 = inlined_call_operand.hbm [shape: f32[4,8], index: 23, kind: output, shape index: {0}]   ;;  %s7166_s24 = inlined_call_operand.hbm [shape: f32[2,4,32], index: 24, kind: output, shape index: {1}]  }
   0x1   :  { %7174 = sst [smem:[#allocation8_spill]] %s7142_s0 }
   0x2   :  { %7175 = sst [smem:[#allocation9_spill]] %s7143_s1 }
   0x3   :  { %7176 = sst [smem:[#allocation10_spill]] %s7144_s2 }
   0x4   :  { %7177 = sst [smem:[#allocation11_spill]] %s7145_s3 }
   0x5   :  { %7178 = sst [smem:[#allocation12_spill]] %s7146_s4 }
   0x6   :  { %7179 = sst [smem:[#allocation13_spill]] %s7147_s5 }
   0x7   :  { %7180 = sst [smem:[#allocation14_spill]] %s7148_s6 }
   0x8   :  { %7181 = sst [smem:[#allocation15_spill]] %s7149_s7 }
   0x9   :  { %7182 = sst [smem:[#allocation16_spill]] %s7150_s8 }
   0xa   :  { %30 = vsyncpa [#allocation3], 0  ;;  %s7183_s27 = sld [smem:[#allocation9_spill]]  ;;  %s7184_s0 = sld [smem:[#allocation8_spill]]  ;;  %vm110_vm0 = vcmask 130048  }
   0xb   :  { %s7185_s8 = sld [smem:[#allocation10_spill]] }
  0x10   :  { %v82_v0 = vld [vmem:[%s7183_s27] sm:$0xff]  ;;  %v83_v1 = vld [vmem:[%s7183_s27 + $0x8] sm:$0xff]  ;;  %v80_v4 = vld [vmem:[%s7184_s0 + $0x10] sm:$0xff]  ;;  %s7186_s27 = sld [smem:[#allocation11_spill]] }
  0x11   :  { %v78_v2 = vld [vmem:[%s7184_s0] sm:$0xff]  ;;  %v5689_v3 = vpack.c.bf16 %v83_v1, %v82_v0  ;;  %5085 = vmatprep.mubr.msk.f32.mxu1 %vm110_vm0, %v80_v4  ;;  %v85_v6 = vld [vmem:[%s7185_s8 + $0x8] sm:$0xff]  ;;  %v81_v11 = vld [vmem:[%s7184_s0 + $0x18] sm:$0xff] }
  0x12   :  { %5082 = vmatprep.mubr.msk.f32.mxu0 %vm110_vm0, %v78_v2  ;;  %v84_v5 = vld [vmem:[%s7185_s8] sm:$0xff]  ;;  %v79_v10 = vld [vmem:[%s7184_s0 + $0x8] sm:$0xff]  ;;  %s7187_s8 = sld [smem:[#allocation12_spill]] }
  0x13   :  { %5690 = vmatprep.subr.bf16.mxu0 %v5689_v3  ;;  %6019 = vmatprep.subr.bf16.mxu1 %v5689_v3  ;;  %v5693_v8 = vpack.c.bf16 %v85_v6, %v84_v5 }
  0x14   :  { %5692 = vmatpush3.bf16.msra.mxu0 %v5689_v3  ;;  %6020 = vmatpush3.bf16.msra.mxu1 %v5689_v3 }
  0x15   :  { %5694 = vmatprep.subr.bf16.mxu1 %v5693_v8 }
  0x16   :  { %v86_v7 = vld [vmem:[%s7186_s27] sm:$0xff]  ;;  %v87_v9 = vld [vmem:[%s7186_s27 + $0x8] sm:$0xff]  ;;  %s7188_s27 = sld [smem:[#allocation13_spill]] }
  0x17   :  { %v5697_v12 = vpack.c.bf16 %v87_v9, %v86_v7  ;;  %5083 = vmatmul.mubr.msk.f32.vlgmr.msra.gmra.mrb[0].mxu0 %vm110_vm0, %v79_v10  ;;  %5086 = vmatmul.mubr.msk.f32.vlgmr.msra.gmra.mrb[0].mxu1 %vm110_vm0, %v81_v11 }
  0x18   :  { %v88_v13 = vld [vmem:[%s7187_s8] sm:$0xff]  ;;  %v89_v14 = vld [vmem:[%s7187_s8 + $0x8] sm:$0xff] }
  0x19   :  { %5698 = vmatprep.subr.bf16.mxu0 %v5697_v12 }
  0x1c   :  { %v92_v15 = vld [vmem:[%s7188_s27] sm:$0xff]  ;;  %v93_v16 = vld [vmem:[%s7188_s27 + $0x8] sm:$0xff] }
  0x1d   :  { %31 = vsyncpa [#allocation5], 0  ;;  %5696 = vmatpush3.bf16.msra.mxu1 %v5693_v8  ;;  %5700 = vmatpush3.bf16.msra.mxu0 %v5697_v12  ;;  %v6414_v17 = vpack.c.bf16 %v89_v14, %v88_v13  ;;  %v6416_v18 = vpack.c.bf16 %v93_v16, %v92_v15  ;;  %v90_v19 = vld [vmem:[%s7187_s8 + $0x10] sm:$0xff]  ;;  %v91_v20 = vld [vmem:[%s7187_s8 + $0x18] sm:$0xff]  ;;  %v6236_v23 = vmov 0.0|0.0   ;;  %s7189_s5 = sld [smem:[#allocation14_spill]] }
  0x1e   :  { %5092 = vmatprep.mubr.msk.f32.mxu1 %vm110_vm0, %v78_v2  ;;  %5102 = vmatprep.mubr.msk.f32.mxu0 %vm110_vm0, %v78_v2  ;;  %v94_v21 = vld [vmem:[%s7188_s27 + $0x10] sm:$0xff]  ;;  %v95_v22 = vld [vmem:[%s7188_s27 + $0x18] sm:$0xff]  ;;  %v6438_v24 = vpack.c.bf16 %v91_v20, %v90_v19  ;;  %vm6237_vm1 = vmmov 0   ;;  %v6238_v29 = vmov 0.0   ;;  %s7190_s30 = sld [smem:[#allocation15_spill]]  ;;  %s7191_s4 = sld [smem:[#allocation16_spill]] }
  0x1f   :  { %5701 = vmatprep.subr.bf16.mxu1 %v6236_v23  ;;  %5707 = vmatprep.subr.bf16.mxu0 %v6236_v23  ;;  %v6440_v25 = vpack.c.bf16 %v95_v22, %v94_v21  ;;  %v4693_v42 = vld [vmem:[%s7151_s9] ss:$0 sm:$0xff]  ;;  %vm390_vm2 = vcmask 261120   ;;  %vm2321_vm3 = vcmask 1043456   ;;  %vm2319_vm4 = vcmask 261124   ;;  %s6239_s9 = smov [#allocation2]  }
  0x20   :  { %5093 = vmatmul.mubr.msk.f32.vlgmr.msra.gmra.mrb[2].mxu1 %vm110_vm0, %v79_v10  ;;  %5103 = vmatmul.mubr.msk.f32.vlgmr.msra.gmra.mrb[2].mxu0 %vm110_vm0, %v79_v10  ;;  %v6526_v8 = vld [vmem:[%s7152_s10] ss:$0 sm:$0xff]  ;;  %vm4651_vm5 = vcmask 60416  }
  0x21   :  { %5703 = vmatpush3.bf16.msra.mxu1 %v6414_v17  ;;  %5709 = vmatpush3.bf16.msra.mxu0 %v6416_v18 }
  0x22   :  { %5095 = vmatprep.mubr.msk.f32.mxu1 %vm110_vm0, %v80_v4  ;;  %5105 = vmatprep.mubr.msk.f32.mxu0 %vm110_vm0, %v80_v4 }
  0x23   :  { %v96_v26 = vld [vmem:[%s7189_s5] sm:$0xff]  ;;  %v97_v27 = vld [vmem:[%s7189_s5 + $0x8] sm:$0xff]  ;;  %5704 = vmatprep.subr.bf16.mxu1 %v6236_v23  ;;  %5710 = vmatprep.subr.bf16.mxu0 %v6236_v23  ;;  %v98_v30 = vld [vmem:[%s7189_s5 + $0x10] sm:$0xff] }
  0x24   :  { %5096 = vmatmul.mubr.msk.f32.gmra.mrb[4].mxu1 %vm110_vm0, %v81_v11  ;;  %5106 = vmatmul.mubr.msk.f32.gmra.mrb[4].mxu0 %vm110_vm0, %v81_v11  ;;  %v6456_v28 = vpack.c.bf16 %v97_v27, %v96_v26  ;;  %v99_v31 = vld [vmem:[%s7189_s5 + $0x18] sm:$0xff]  ;;  %v4683_v33 = vld [vmem:[%s7190_s30] ss:$0 sm:$0xff]  ;;  %s4659_s5 = sshll.u32 %s6239_s9, 4  ;;  %s4660_s5 = int_to_ptr.vmem [resolvable:$true] %s4659_s5 }
  0x25   :  { %5706 = vmatpush3.bf16.msra.mxu1 %v6438_v24  ;;  %5712 = vmatpush3.bf16.msra.mxu0 %v6440_v25  ;;  %v6473_v32 = vpack.c.bf16 %v99_v31, %v98_v30  ;;  %v4688_v41 = vld [vmem:[%s7191_s4] ss:$0 sm:$0xff]  ;;  %s6188_s10 = scalar_lea.vmem %s4660_s5, 64  ;;  %p6193_p1 = scmp.lt.s32.totalorder %s4660_s5, %s4660_s5 }
  0x26   :  { %5116 = vmatprep.mubr.msk.f32.mxu1 %vm6237_vm1, %v6238_v29  ;;  %5127 = vmatprep.mubr.msk.f32.mxu0 %vm6237_vm1, %v6238_v29  ;;  %p6189_p0 = scmp.ne.s32.totalorder %s4660_s5, %s6188_s10  ;;  %p6194_p2 = scmp.lt.s32.totalorder %s6188_s10, %s6188_s10 }
  0x27   :  { %5713 = vmatprep.subr.bf16.mxu1 %v6236_v23  ;;  %5719 = vmatprep.subr.bf16.mxu0 %v6236_v23 }
  0x28   :  { %5117 = vmatmul.mubr.f32.vlgmr.msra.gmra.mrb[6].mxu1 %v6238_v29  ;;  %5128 = vmatmul.mubr.f32.vlgmr.msra.gmra.mrb[6].mxu0 %v6238_v29  ;;  %p6195_p3 = por %p6194_p2, %p6193_p1 }
  0x29   :  { %5715 = vmatpush3.bf16.msra.mxu1 %v6456_v28  ;;  %5138 = vmatprep.mubr.msk.f32.mxu1 %vm6237_vm1, %v6238_v29 }
  0x2a   :  { %5716 = vmatprep.subr.bf16.mxu1 %v6236_v23  ;;  %5721 = vmatpush3.bf16.msra.mxu0 %v6414_v17  ;;  %p6196_p4 = pnand %p6195_p3, %p6189_p0 }
  0x2b   :  { %5722 = vmatprep.subr.bf16.mxu0 %v6236_v23  ;;  %5149 = vmatprep.mubr.msk.f32.mxu0 %vm6237_vm1, %v6238_v29 }
  0x2d   :  { %5718 = vmatpush3.bf16.msra.mxu1 %v6473_v32 }
  0x2e   :  { %5725 = vmatprep.subr.bf16.mxu1 %v6236_v23  ;;  %5724 = vmatpush3.bf16.msra.mxu0 %v6438_v24 }
  0x2f   :  { %5731 = vmatprep.subr.bf16.mxu0 %v6236_v23 }
  0x30   :  { %5139 = vmatmul.mubr.f32.vlgmr.msra.gmra.mrb[8].mxu1 %v6238_v29 }
  0x31   :  { %5727 = vmatpush3.bf16.msra.mxu1 %v6416_v18  ;;  %5160 = vmatprep.mubr.msk.f32.mxu1 %vm6237_vm1, %v6238_v29 }
  0x32   :  { %5728 = vmatprep.subr.bf16.mxu1 %v6236_v23 }
  0x35   :  { %5730 = vmatpush3.bf16.msra.mxu1 %v6440_v25 }
  0x36   :  { %5737 = vmatprep.subr.bf16.mxu1 %v6236_v23 }
  0xea   :  { %v5087_v34 = vpop.f32.mrb[0].mxu1  ;;  %v5084_v35 = vpop.f32.mrb[0].mxu0 }
  0xeb   :  { %v6496_v36 = vadd.f32 %v5087_v34, %v4683_v33  ;;  %v199_v37 = vpop.f32.mrb[1].mxu1  ;;  %v6498_v38 = vadd.f32 %v5084_v35, %v4683_v33  ;;  %v189_v39 = vpop.f32.mrb[1].mxu0 }
  0xec   :  { %v6500_v40 = vadd.f32 %v4683_v33, %v199_v37  ;;  %v6512_v51 = vadd.f32 %v4683_v33, %v189_v39 }
  0xf3   :  { %v5094_v43 = vpop.f32.mrb[2].mxu1  ;;  %v5104_v44 = vpop.f32.mrb[2].mxu0 }
  0xf4   :  { %v6508_v45 = vadd.f32 %v5094_v43, %v4688_v41  ;;  %v280_v46 = vpop.f32.mrb[3].mxu1  ;;  %v6510_v47 = vadd.f32 %v5104_v44, %v4693_v42  ;;  %v371_v48 = vpop.f32.mrb[3].mxu0 }
  0xf5   :  { %v281_v63 = vadd.f32 %v4688_v41, %v280_v46  ;;  %v372_v12 = vadd.f32 %v4693_v42, %v371_v48 }
  0xf7   :  { %v5097_v49 = vpop.f32.mrb[4].mxu1  ;;  %v5107_v50 = vpop.f32.mrb[4].mxu0 }
  0xf8   :  { %v6514_v52 = vadd.f32 %v5097_v49, %v4688_v41  ;;  %v290_v53 = vpop.f32.mrb[5].mxu1  ;;  %v6516_v54 = vadd.f32 %v5107_v50, %v4693_v42  ;;  %v381_v55 = vpop.f32.mrb[5].mxu0 }
  0xf9   :  { %v6518_v56 = vadd.f32 %v4688_v41, %v290_v53  ;;  %v6520_v57 = vadd.f32 %v4693_v42, %v381_v55 }
  0xfb   :  { %v460_v58 = vpop.f32.mrb[6].mxu1  ;;  %v530_v59 = vpop.f32.mrb[6].mxu0 }
  0xfc   :  { %v610_v60 = vadd.f32 %v460_v58, %v6512_v51  ;;  %v5118_v61 = vpop.f32.mrb[7].mxu1  ;;  %v5129_v62 = vpop.f32.mrb[7].mxu0  ;;  %v617_v1 = vadd.f32 %v530_v59, %v281_v63 }
  0xfe   :  { %v4699_v0 = vmul.f32 -1.442695, %v610_v60  ;;  %v4700_v2 = vmul.f32 -1.442695, %v617_v1 }
 0x100   :  { %6028 = vpow2.f32 %v4699_v0 }
 0x101   :  { %6030 = vpow2.f32 %v4700_v2 }
 0x103   :  { %v606_v3 = vpop.f32.mrb[8].mxu1 }
 0x104   :  { %v5140_v4 = vpop.f32.mrb[9].mxu1  ;;  %v607_v10 = vadd.f32 %v6526_v8, %v606_v3 }
 0x10a   :  { %v6029_v5 = vpop.eup %6028 }
 0x10b   :  { %v614_v6 = vadd.f32 1.0, %v6029_v5  ;;  %v6031_v7 = vpop.eup %6030 }
 0x10c   :  { %v621_v9 = vadd.f32 1.0, %v6031_v7 }
 0x10d   :  { %6032 = vrcp.f32 %v614_v6 }
 0x10e   :  { %6034 = vrcp.f32 %v621_v9 }
 0x117   :  { %v6033_v11 = vpop.eup %6032 }
 0x118   :  { %v624_v13 = vmul.f32 %v6033_v11, %v607_v10  ;;  %v6035_v15 = vpop.eup %6034 }
 0x119   :  { %v627_v16 = vsub.f32 1.0, %v6035_v15  ;;  %v629_v21 = vmul.f32 0.0, %v6035_v15 }
 0x11a   :  { %v625_v14 = vadd.f32 %v624_v13, %v372_v12 }
 0x11c   :  { %6036 = vtanh.f32 %v625_v14 }
 0x126   :  { %v6037_v19 = vpop.eup %6036 }
 0x127   :  { %v628_v20 = vmul.f32 %v6037_v19, %v627_v16 }
 0x129   :  { %v6529_v22 = vadd.f32 %v629_v21, %v628_v20 }
 0x12b   :  { %5150 = vmatmul.mubr.msk.f32.vlgmr.msra.gmra.mrb[8].mxu0 %vm390_vm2, %v6529_v22  ;;  %5161 = vmatmul.mubr.msk.f32.vlgmr.msra.gmra.mrb[10].mxu1 %vm390_vm2, %v6529_v22  ;;  %v872_v61 = vrot.slane %v6529_v22, 4 }
 0x12c   :  { %5733 = vmatpush3.bf16.msra.mxu0 %v6456_v28  ;;  %5171 = vmatprep.mubr.msk.f32.mxu0 %vm6237_vm1, %v6238_v29 }
 0x12d   :  { %5734 = vmatprep.subr.bf16.mxu0 %v6236_v23  ;;  %5739 = vmatpush3.bf16.msra.mxu1 %v6414_v17 }
 0x12e   :  { %5740 = vmatprep.subr.bf16.mxu1 %v6236_v23  ;;  %5182 = vmatprep.mubr.msk.f32.mxu1 %vm6237_vm1, %v6238_v29 }
 0x130   :  { %5736 = vmatpush3.bf16.msra.mxu0 %v6473_v32 }
 0x131   :  { %5743 = vmatprep.subr.bf16.mxu0 %v6236_v23  ;;  %5742 = vmatpush3.bf16.msra.mxu1 %v6438_v24 }
 0x132   :  { %5749 = vmatprep.subr.bf16.mxu1 %v6236_v23 }
 0x133   :  { %5172 = vmatmul.mubr.msk.f32.vlgmr.msra.gmra.mrb[10].mxu0 %vm390_vm2, %v6529_v22 }
 0x134   :  { %5745 = vmatpush3.bf16.msra.mxu0 %v6416_v18  ;;  %5193 = vmatprep.mubr.msk.f32.mxu0 %vm6237_vm1, %v6238_v29 }
 0x135   :  { %5746 = vmatprep.subr.bf16.mxu0 %v6236_v23 }
 0x138   :  { %5748 = vmatpush3.bf16.msra.mxu0 %v6440_v25 }
 0x139   :  { %5755 = vmatprep.subr.bf16.mxu0 %v6236_v23 }
 0x1fe   :  { %v700_v26 = vpop.f32.mrb[8].mxu0  ;;  %v770_v27 = vpop.f32.mrb[10].mxu1 }
 0x1ff   :  { %v845_v30 = vrot.slane %v700_v26, 4  ;;  %v5151_v31 = vpop.f32.mrb[9].mxu0  ;;  %v5162_v33 = vpop.f32.mrb[11].mxu1  ;;  %v855_v34 = vrot.slane %v770_v27, 4 }
 0x201   :  { %v847_v35 = vadd.f32 %v845_v30, %v6512_v51  ;;  %v857_v39 = vadd.f32 %v855_v34, %v281_v63 }
 0x203   :  { %v4704_v37 = vmul.f32 -1.442695, %v847_v35  ;;  %v4705_v43 = vmul.f32 -1.442695, %v857_v39 }
 0x205   :  { %6038 = vpow2.f32 %v4704_v37 }
 0x206   :  { %v840_v41 = vpop.f32.mrb[10].mxu0  ;;  %6040 = vpow2.f32 %v4705_v43 }
 0x207   :  { %v5173_v42 = vpop.f32.mrb[11].mxu0  ;;  %v841_v49 = vadd.f32 %v6526_v8, %v840_v41 }
 0x209   :  { %v865_v53 = vrot.slane %v841_v49, 4 }
 0x20f   :  { %v6039_v44 = vpop.eup %6038 }
 0x210   :  { %v851_v46 = vadd.f32 1.0, %v6039_v44  ;;  %v6041_v48 = vpop.eup %6040 }
 0x211   :  { %v861_v50 = vadd.f32 1.0, %v6041_v48 }
 0x212   :  { %6042 = vrcp.f32 %v851_v46 }
 0x213   :  { %6044 = vrcp.f32 %v861_v50 }
 0x21c   :  { %v6043_v55 = vpop.eup %6042 }
 0x21d   :  { %v867_v58 = vmul.f32 %v6043_v55, %v865_v53  ;;  %v6045_v51 = vpop.eup %6044 }
 0x21e   :  { %v870_v60 = vsub.f32 1.0, %v6045_v51  ;;  %v874_v0 = vmul.f32 %v6045_v51, %v872_v61 }
 0x21f   :  { %v868_v59 = vadd.f32 %v867_v58, %v372_v12 }
 0x221   :  { %6046 = vtanh.f32 %v868_v59 }
 0x22b   :  { %v6047_v62 = vpop.eup %6046 }
 0x22c   :  { %v871_v63 = vmul.f32 %v6047_v62, %v870_v60 }
 0x22e   :  { %v6558_v1 = vadd.f32 %v874_v0, %v871_v63 }
 0x230   :  { %v877_v2 = vrot.slane %v6558_v1, 4 }
 0x232   :  { %5183 = vmatmul.mubr.msk.f32.vlgmr.msra.gmra.mrb[12].mxu1 %vm390_vm2, %v877_v2  ;;  %5194 = vmatmul.mubr.msk.f32.vlgmr.msra.gmra.mrb[12].mxu0 %vm390_vm2, %v877_v2 }
 0x233   :  { %5751 = vmatpush3.bf16.msra.mxu1 %v6456_v28  ;;  %5204 = vmatprep.mubr.msk.f32.mxu1 %vm6237_vm1, %v6238_v29 }
 0x234   :  { %5752 = vmatprep.subr.bf16.mxu1 %v6236_v23  ;;  %5757 = vmatpush3.bf16.msra.mxu0 %v6414_v17 }
 0x235   :  { %5758 = vmatprep.subr.bf16.mxu0 %v6236_v23  ;;  %5215 = vmatprep.mubr.msk.f32.mxu0 %vm6237_vm1, %v6238_v29 }
 0x237   :  { %5754 = vmatpush3.bf16.msra.mxu1 %v6473_v32 }
 0x238   :  { %5761 = vmatprep.subr.bf16.mxu1 %v6236_v23  ;;  %5760 = vmatpush3.bf16.msra.mxu0 %v6438_v24 }
 0x239   :  { %5767 = vmatprep.subr.bf16.mxu0 %v6236_v23 }
 0x23a   :  { %5205 = vmatmul.mubr.msk.f32.vlgmr.msra.gmra.mrb[14].mxu1 %vm390_vm2, %v877_v2 }
 0x23b   :  { %5763 = vmatpush3.bf16.msra.mxu1 %v6416_v18  ;;  %5226 = vmatprep.mubr.msk.f32.mxu1 %vm6237_vm1, %v6238_v29 }
 0x23c   :  { %5764 = vmatprep.subr.bf16.mxu1 %v6236_v23 }
 0x23f   :  { %5766 = vmatpush3.bf16.msra.mxu1 %v6440_v25 }
 0x240   :  { %5773 = vmatprep.subr.bf16.mxu1 %v6236_v23 }
 0x305   :  { %v946_v3 = vpop.f32.mrb[12].mxu1  ;;  %v1016_v4 = vpop.f32.mrb[12].mxu0 }
 0x306   :  { %v1090_v5 = vadd.f32 %v946_v3, %v6498_v38  ;;  %v5184_v6 = vpop.f32.mrb[13].mxu1  ;;  %v5195_v7 = vpop.f32.mrb[13].mxu0  ;;  %v1097_v10 = vadd.f32 %v1016_v4, %v6508_v45 }
 0x308   :  { %v4709_v9 = vmul.f32 -1.442695, %v1090_v5  ;;  %v4710_v11 = vmul.f32 -1.442695, %v1097_v10 }
 0x30a   :  { %6048 = vpow2.f32 %v4709_v9 }
 0x30b   :  { %6050 = vpow2.f32 %v4710_v11 }
 0x30d   :  { %v1086_v12 = vpop.f32.mrb[14].mxu1 }
 0x30e   :  { %v5206_v13 = vpop.f32.mrb[15].mxu1  ;;  %v1087_v20 = vadd.f32 %v6526_v8, %v1086_v12 }
 0x314   :  { %v6049_v14 = vpop.eup %6048 }
 0x315   :  { %v1094_v15 = vadd.f32 1.0, %v6049_v14  ;;  %v6051_v16 = vpop.eup %6050 }
 0x316   :  { %v1101_v19 = vadd.f32 1.0, %v6051_v16 }
 0x317   :  { %6052 = vrcp.f32 %v1094_v15 }
 0x318   :  { %6054 = vrcp.f32 %v1101_v19 }
 0x321   :  { %v6053_v21 = vpop.eup %6052 }
 0x322   :  { %v1104_v26 = vmul.f32 %v6053_v21, %v1087_v20  ;;  %v6055_v30 = vpop.eup %6054 }
 0x323   :  { %v1107_v31 = vsub.f32 1.0, %v6055_v30  ;;  %v1110_v35 = vmul.f32 %v6055_v30, %v877_v2 }
 0x324   :  { %v1105_v27 = vadd.f32 %v1104_v26, %v6510_v47 }
 0x326   :  { %6056 = vtanh.f32 %v1105_v27 }
 0x330   :  { %v6057_v33 = vpop.eup %6056 }
 0x331   :  { %v1108_v34 = vmul.f32 %v6057_v33, %v1107_v31 }
 0x333   :  { %v6586_v37 = vadd.f32 %v1110_v35, %v1108_v34 }
 0x335   :  { %5216 = vmatmul.mubr.msk.f32.vlgmr.msra.gmra.mrb[14].mxu0 %vm390_vm2, %v6586_v37  ;;  %5227 = vmatmul.mubr.msk.f32.vlgmr.msra.gmra.mrb[16].mxu1 %vm390_vm2, %v6586_v37  ;;  %v1353_v4 = vrot.slane %v6586_v37, 4 }
 0x336   :  { %5769 = vmatpush3.bf16.msra.mxu0 %v6456_v28  ;;  %5237 = vmatprep.mubr.msk.f32.mxu0 %vm6237_vm1, %v6238_v29 }
 0x337   :  { %5770 = vmatprep.subr.bf16.mxu0 %v6236_v23  ;;  %5775 = vmatpush3.bf16.msra.mxu1 %v6414_v17 }
 0x338   :  { %5776 = vmatprep.subr.bf16.mxu1 %v6236_v23  ;;  %5248 = vmatprep.mubr.msk.f32.mxu1 %vm6237_vm1, %v6238_v29 }
 0x33a   :  { %5772 = vmatpush3.bf16.msra.mxu0 %v6473_v32 }
 0x33b   :  { %5779 = vmatprep.subr.bf16.mxu0 %v6236_v23  ;;  %5778 = vmatpush3.bf16.msra.mxu1 %v6438_v24 }
 0x33c   :  { %5785 = vmatprep.subr.bf16.mxu1 %v6236_v23 }
 0x33d   :  { %5238 = vmatmul.mubr.msk.f32.vlgmr.msra.gmra.mrb[16].mxu0 %vm390_vm2, %v6586_v37 }
 0x33e   :  { %5781 = vmatpush3.bf16.msra.mxu0 %v6416_v18  ;;  %5259 = vmatprep.mubr.msk.f32.mxu0 %vm6237_vm1, %v6238_v29 }
 0x33f   :  { %5782 = vmatprep.subr.bf16.mxu0 %v6236_v23 }
 0x342   :  { %5784 = vmatpush3.bf16.msra.mxu0 %v6440_v25 }
 0x343   :  { %5791 = vmatprep.subr.bf16.mxu0 %v6236_v23 }
 0x408   :  { %v1181_v39 = vpop.f32.mrb[14].mxu0  ;;  %v1251_v41 = vpop.f32.mrb[16].mxu1 }
 0x409   :  { %v1326_v42 = vrot.slane %v1181_v39, 4  ;;  %v5217_v43 = vpop.f32.mrb[15].mxu0  ;;  %v5228_v44 = vpop.f32.mrb[17].mxu1  ;;  %v1336_v46 = vrot.slane %v1251_v41, 4 }
 0x40b   :  { %v1328_v48 = vadd.f32 %v1326_v42, %v6498_v38  ;;  %v1338_v50 = vadd.f32 %v1336_v46, %v6508_v45 }
 0x40d   :  { %v4714_v49 = vmul.f32 -1.442695, %v1328_v48  ;;  %v4715_v58 = vmul.f32 -1.442695, %v1338_v50 }
 0x40f   :  { %6058 = vpow2.f32 %v4714_v49 }
 0x410   :  { %v1321_v53 = vpop.f32.mrb[16].mxu0  ;;  %6060 = vpow2.f32 %v4715_v58 }
 0x411   :  { %v5239_v55 = vpop.f32.mrb[17].mxu0  ;;  %v1322_v61 = vadd.f32 %v6526_v8, %v1321_v53 }
 0x413   :  { %v1346_v63 = vrot.slane %v1322_v61, 4 }
 0x419   :  { %v6059_v59 = vpop.eup %6058 }
 0x41a   :  { %v1332_v51 = vadd.f32 1.0, %v6059_v59  ;;  %v6061_v60 = vpop.eup %6060 }
 0x41b   :  { %v1342_v62 = vadd.f32 1.0, %v6061_v60 }
 0x41c   :  { %6062 = vrcp.f32 %v1332_v51 }
 0x41d   :  { %6064 = vrcp.f32 %v1342_v62 }
 0x426   :  { %v6063_v0 = vpop.eup %6062 }
 0x427   :  { %v1348_v2 = vmul.f32 %v6063_v0, %v1346_v63  ;;  %v6065_v45 = vpop.eup %6064 }
 0x428   :  { %v1351_v3 = vsub.f32 1.0, %v6065_v45  ;;  %v1355_v7 = vmul.f32 %v6065_v45, %v1353_v4 }
 0x429   :  { %v1349_v38 = vadd.f32 %v1348_v2, %v6510_v47 }
 0x42b   :  { %6066 = vtanh.f32 %v1349_v38 }
 0x435   :  { %v6067_v5 = vpop.eup %6066 }
 0x436   :  { %v1352_v6 = vmul.f32 %v6067_v5, %v1351_v3 }
 0x438   :  { %v6617_v9 = vadd.f32 %v1355_v7, %v1352_v6 }
 0x43a   :  { %v1358_v10 = vrot.slane %v6617_v9, 4 }
 0x43c   :  { %5249 = vmatmul.mubr.msk.f32.vlgmr.msra.gmra.mrb[18].mxu1 %vm390_vm2, %v1358_v10  ;;  %5260 = vmatmul.mubr.msk.f32.vlgmr.msra.gmra.mrb[18].mxu0 %vm390_vm2, %v1358_v10 }
 0x43d   :  { %5787 = vmatpush3.bf16.msra.mxu1 %v6456_v28  ;;  %5270 = vmatprep.mubr.msk.f32.mxu1 %vm6237_vm1, %v6238_v29 }
 0x43e   :  { %5788 = vmatprep.subr.bf16.mxu1 %v6236_v23  ;;  %5793 = vmatpush3.bf16.msra.mxu0 %v6414_v17 }
 0x43f   :  { %5794 = vmatprep.subr.bf16.mxu0 %v6236_v23  ;;  %5281 = vmatprep.mubr.msk.f32.mxu0 %vm6237_vm1, %v6238_v29 }
 0x441   :  { %5790 = vmatpush3.bf16.msra.mxu1 %v6473_v32 }
 0x442   :  { %5797 = vmatprep.subr.bf16.mxu1 %v6236_v23  ;;  %5796 = vmatpush3.bf16.msra.mxu0 %v6438_v24 }
 0x443   :  { %5803 = vmatprep.subr.bf16.mxu0 %v6236_v23 }
 0x444   :  { %5271 = vmatmul.mubr.msk.f32.vlgmr.msra.gmra.mrb[20].mxu1 %vm390_vm2, %v1358_v10 }
 0x445   :  { %5799 = vmatpush3.bf16.msra.mxu1 %v6416_v18  ;;  %5292 = vmatprep.mubr.msk.f32.mxu1 %vm6237_vm1, %v6238_v29 }
 0x446   :  { %5800 = vmatprep.subr.bf16.mxu1 %v6236_v23 }
 0x449   :  { %5802 = vmatpush3.bf16.msra.mxu1 %v6440_v25 }
 0x44a   :  { %5809 = vmatprep.subr.bf16.mxu1 %v6236_v23 }
 0x50f   :  { %v1427_v47 = vpop.f32.mrb[18].mxu1  ;;  %v1497_v11 = vpop.f32.mrb[18].mxu0 }
 0x510   :  { %v1571_v12 = vadd.f32 %v1427_v47, %v6500_v40  ;;  %v5250_v13 = vpop.f32.mrb[19].mxu1  ;;  %v5261_v14 = vpop.f32.mrb[19].mxu0  ;;  %v1578_v16 = vadd.f32 %v1497_v11, %v6518_v56 }
 0x512   :  { %v4719_v15 = vmul.f32 -1.442695, %v1571_v12  ;;  %v4720_v19 = vmul.f32 -1.442695, %v1578_v16 }
 0x514   :  { %6068 = vpow2.f32 %v4719_v15 }
 0x515   :  { %6070 = vpow2.f32 %v4720_v19 }
 0x517   :  { %v1567_v20 = vpop.f32.mrb[20].mxu1 }
 0x518   :  { %v5272_v21 = vpop.f32.mrb[21].mxu1  ;;  %v1568_v33 = vadd.f32 %v6526_v8, %v1567_v20 }
 0x51e   :  { %v6069_v26 = vpop.eup %6068 }
 0x51f   :  { %v1575_v27 = vadd.f32 1.0, %v6069_v26  ;;  %v6071_v30 = vpop.eup %6070 }
 0x520   :  { %v1582_v31 = vadd.f32 1.0, %v6071_v30 }
 0x521   :  { %6072 = vrcp.f32 %v1575_v27 }
 0x522   :  { %6074 = vrcp.f32 %v1582_v31 }
 0x52b   :  { %v6073_v34 = vpop.eup %6072 }
 0x52c   :  { %v1585_v35 = vmul.f32 %v6073_v34, %v1568_v33  ;;  %v6075_v41 = vpop.eup %6074 }
 0x52d   :  { %v1588_v42 = vsub.f32 1.0, %v6075_v41  ;;  %v1591_v46 = vmul.f32 %v6075_v41, %v1358_v10 }
 0x52e   :  { %v1586_v39 = vadd.f32 %v1585_v35, %v6520_v57 }
 0x530   :  { %6076 = vtanh.f32 %v1586_v39 }
 0x53a   :  { %v6077_v43 = vpop.eup %6076 }
 0x53b   :  { %v1589_v44 = vmul.f32 %v6077_v43, %v1588_v42 }
 0x53d   :  { %v6645_v48 = vadd.f32 %v1591_v46, %v1589_v44 }
 0x53f   :  { %5282 = vmatmul.mubr.msk.f32.vlgmr.msra.gmra.mrb[20].mxu0 %vm390_vm2, %v6645_v48  ;;  %5293 = vmatmul.mubr.msk.f32.vlgmr.msra.gmra.mrb[22].mxu1 %vm390_vm2, %v6645_v48  ;;  %v1834_v47 = vrot.slane %v6645_v48, 4 }
 0x540   :  { %5805 = vmatpush3.bf16.msra.mxu0 %v6456_v28  ;;  %5303 = vmatprep.mubr.msk.f32.mxu0 %vm6237_vm1, %v6238_v29 }
 0x541   :  { %5806 = vmatprep.subr.bf16.mxu0 %v6236_v23  ;;  %5811 = vmatpush3.bf16.msra.mxu1 %v6414_v17 }
 0x542   :  { %5812 = vmatprep.subr.bf16.mxu1 %v6236_v23  ;;  %5314 = vmatprep.mubr.msk.f32.mxu1 %vm6237_vm1, %v6238_v29 }
 0x544   :  { %5808 = vmatpush3.bf16.msra.mxu0 %v6473_v32 }
 0x545   :  { %5815 = vmatprep.subr.bf16.mxu0 %v6236_v23  ;;  %5814 = vmatpush3.bf16.msra.mxu1 %v6438_v24 }
 0x546   :  { %5821 = vmatprep.subr.bf16.mxu1 %v6236_v23 }
 0x547   :  { %5304 = vmatmul.mubr.msk.f32.vlgmr.msra.gmra.mrb[22].mxu0 %vm390_vm2, %v6645_v48 }
 0x548   :  { %5817 = vmatpush3.bf16.msra.mxu0 %v6416_v18  ;;  %5325 = vmatprep.mubr.msk.f32.mxu0 %vm6237_vm1, %v6238_v29 }
 0x549   :  { %5818 = vmatprep.subr.bf16.mxu0 %v6236_v23 }
 0x54c   :  { %5820 = vmatpush3.bf16.msra.mxu0 %v6440_v25 }
 0x54d   :  { %5827 = vmatprep.subr.bf16.mxu0 %v6236_v23 }
 0x612   :  { %v1662_v49 = vpop.f32.mrb[20].mxu0  ;;  %v1732_v50 = vpop.f32.mrb[22].mxu1 }
 0x613   :  { %v1807_v53 = vrot.slane %v1662_v49, 4  ;;  %v5283_v55 = vpop.f32.mrb[21].mxu0  ;;  %v5294_v58 = vpop.f32.mrb[23].mxu1  ;;  %v1817_v59 = vrot.slane %v1732_v50, 4 }
 0x614   :  { %v2328_v58 = vld [vmem:[%s7153_s11 + $0x10] sm:$0xff] }
 0x615   :  { %v1809_v51 = vadd.f32 %v1807_v53, %v6500_v40  ;;  %v1819_v61 = vadd.f32 %v1817_v59, %v6518_v56  ;;  %v2329_v59 = vld [vmem:[%s7153_s11 + $0x18] sm:$0xff] }
 0x617   :  { %v4724_v60 = vmul.f32 -1.442695, %v1809_v51  ;;  %v4725_v0 = vmul.f32 -1.442695, %v1819_v61  ;;  %v2330_v61 = vld [vmem:[%s7154_s12] sm:$0xff] }
 0x619   :  { %6078 = vpow2.f32 %v4724_v60  ;;  %v5849_v60 = vpack.c.bf16 %v2329_v59, %v2328_v58  ;;  %v2344_v59 = vld [vmem:[%s7157_s15 + $0x10] sm:$0xff] }
 0x61a   :  { %v1802_v62 = vpop.f32.mrb[22].mxu0  ;;  %6080 = vpow2.f32 %v4725_v0 }
 0x61b   :  { %v5305_v63 = vpop.f32.mrb[23].mxu0  ;;  %v1803_v3 = vadd.f32 %v6526_v8, %v1802_v62  ;;  %v2331_v62 = vld [vmem:[%s7154_s12 + $0x8] sm:$0xff] }
 0x61c   :  { %v6731_v63 = vsel %vm2321_vm3, %v6529_v22, %v6558_v1  ;;  %v5853_v0 = vpack.c.bf16 %v2331_v62, %v2330_v61  ;;  %v6748_v1 = vsel %vm2321_vm3, %v6586_v37, %v6617_v9  ;;  %v2335_v37 = vld [vmem:[%s7155_s13 + $0x8] sm:$0xff]  ;;  %v2338_v9 = vld [vmem:[%s7156_s14] sm:$0xff]  ;;  %v2348_v61 = vld [vmem:[%s7158_s16 + $0x10] sm:$0xff] }
 0x61d   :  { %v1827_v5 = vrot.slane %v1803_v3, 4  ;;  %v2349_v62 = vld [vmem:[%s7158_s16 + $0x18] sm:$0xff] }
 0x623   :  { %v6079_v2 = vpop.eup %6078 }
 0x624   :  { %v1813_v38 = vadd.f32 1.0, %v6079_v2  ;;  %v6081_v45 = vpop.eup %6080  ;;  %v2333_v2 = vld [vmem:[%s7154_s12 + $0x18] sm:$0xff] }
 0x625   :  { %v1823_v4 = vadd.f32 1.0, %v6081_v45  ;;  %v2339_v45 = vld [vmem:[%s7156_s14 + $0x8] sm:$0xff] }
 0x626   :  { %6082 = vrcp.f32 %v1813_v38  ;;  %v6780_v3 = vpack.c.bf16 %v2339_v45, %v2338_v9 }
 0x627   :  { %6084 = vrcp.f32 %v1823_v4  ;;  %v2336_v4 = vld [vmem:[%s7155_s13 + $0x10] sm:$0xff] }
 0x630   :  { %v6083_v6 = vpop.eup %6082 }
 0x631   :  { %v1829_v7 = vmul.f32 %v6083_v6, %v1827_v5  ;;  %v6085_v56 = vpop.eup %6084  ;;  %v2337_v5 = vld [vmem:[%s7155_s13 + $0x18] sm:$0xff] }
 0x632   :  { %v1832_v10 = vsub.f32 1.0, %v6085_v56  ;;  %v1836_v13 = vmul.f32 %v6085_v56, %v1834_v47  ;;  %v5865_v6 = vpack.c.bf16 %v2337_v5, %v2336_v4 }
 0x633   :  { %v1830_v40 = vadd.f32 %v1829_v7, %v6520_v57  ;;  %v2340_v7 = vld [vmem:[%s7156_s14 + $0x10] sm:$0xff] }
 0x635   :  { %6086 = vtanh.f32 %v1830_v40  ;;  %v2341_v40 = vld [vmem:[%s7156_s14 + $0x18] sm:$0xff] }
 0x636   :  { %v6796_v56 = vpack.c.bf16 %v2341_v40, %v2340_v7  ;;  %v6917_v40 = vld [vmem:[%s7160_s18] ss:$0 sm:$0xff] }
 0x63f   :  { %v6087_v11 = vpop.eup %6086 }
 0x640   :  { %v1833_v12 = vmul.f32 %v6087_v11, %v1832_v10 }
 0x642   :  { %v6676_v14 = vadd.f32 %v1836_v13, %v1833_v12 }
 0x644   :  { %v1839_v15 = vrot.slane %v6676_v14, 4  ;;  %v6757_v38 = vsel %vm2321_vm3, %v6645_v48, %v6676_v14 }
 0x646   :  { %5315 = vmatmul.mubr.msk.f32.vlgmr.msra.gmra.mrb[24].mxu1 %vm390_vm2, %v1839_v15  ;;  %5326 = vmatmul.mubr.msk.f32.vlgmr.msra.gmra.mrb[24].mxu0 %vm390_vm2, %v1839_v15 }
 0x647   :  { %5823 = vmatpush3.bf16.msra.mxu1 %v6456_v28  ;;  %5336 = vmatprep.mubr.msk.f32.mxu1 %vm6237_vm1, %v6238_v29 }
 0x648   :  { %5824 = vmatprep.subr.bf16.mxu1 %v6236_v23  ;;  %5829 = vmatpush3.bf16.msra.mxu0 %v6414_v17  ;;  %v2326_v17 = vld [vmem:[%s7153_s11] sm:$0xff] }
 0x649   :  { %5830 = vmatprep.subr.bf16.mxu0 %v6236_v23  ;;  %5347 = vmatprep.mubr.msk.f32.mxu0 %vm6237_vm1, %v6238_v29 }
 0x64b   :  { %5826 = vmatpush3.bf16.msra.mxu1 %v6473_v32 }
 0x64c   :  { %5833 = vmatprep.subr.bf16.mxu1 %v6236_v23  ;;  %5832 = vmatpush3.bf16.msra.mxu0 %v6438_v24  ;;  %v2327_v24 = vld [vmem:[%s7153_s11 + $0x8] sm:$0xff] }
 0x64d   :  { %5839 = vmatprep.subr.bf16.mxu0 %v6236_v23  ;;  %v5845_v57 = vpack.c.bf16 %v2327_v24, %v2326_v17 }
 0x64e   :  { %5337 = vmatmul.mubr.msk.f32.vlgmr.msra.gmra.mrb[26].mxu1 %vm390_vm2, %v1839_v15 }
 0x64f   :  { %5835 = vmatpush3.bf16.msra.mxu1 %v6416_v18  ;;  %5358 = vmatprep.mubr.msk.f32.mxu1 %vm6237_vm1, %v6238_v29 }
 0x650   :  { %5836 = vmatprep.subr.bf16.mxu1 %v6236_v23 }
 0x653   :  { %5838 = vmatpush3.bf16.msra.mxu1 %v6440_v25 }
 0x654   :  { %5846 = vmatprep.subr.bf16.mxu1 %v5845_v57 }
 0x719   :  { %v1908_v16 = vpop.f32.mrb[24].mxu1  ;;  %v1978_v19 = vpop.f32.mrb[24].mxu0 }
 0x71a   :  { %v2052_v18 = vadd.f32 %v1908_v16, %v6496_v36  ;;  %v5316_v20 = vpop.f32.mrb[25].mxu1  ;;  %v5327_v21 = vpop.f32.mrb[25].mxu0  ;;  %v2059_v27 = vadd.f32 %v1978_v19, %v6514_v52 }
 0x71c   :  { %v4729_v26 = vmul.f32 -1.442695, %v2052_v18  ;;  %v4730_v25 = vmul.f32 -1.442695, %v2059_v27 }
 0x71e   :  { %6088 = vpow2.f32 %v4729_v26 }
 0x71f   :  { %6090 = vpow2.f32 %v4730_v25 }
 0x721   :  { %v2048_v30 = vpop.f32.mrb[26].mxu1 }
 0x722   :  { %v5338_v31 = vpop.f32.mrb[27].mxu1  ;;  %v2049_v41 = vadd.f32 %v6526_v8, %v2048_v30 }
 0x728   :  { %v6089_v33 = vpop.eup %6088 }
 0x729   :  { %v2056_v34 = vadd.f32 1.0, %v6089_v33  ;;  %v6091_v35 = vpop.eup %6090 }
 0x72a   :  { %v2063_v39 = vadd.f32 1.0, %v6091_v35 }
 0x72b   :  { %6092 = vrcp.f32 %v2056_v34 }
 0x72c   :  { %6094 = vrcp.f32 %v2063_v39 }
 0x735   :  { %v6093_v42 = vpop.eup %6092 }
 0x736   :  { %v2066_v43 = vmul.f32 %v6093_v42, %v2049_v41  ;;  %v6095_v46 = vpop.eup %6094 }
 0x737   :  { %v2069_v49 = vsub.f32 1.0, %v6095_v46  ;;  %v2072_v55 = vmul.f32 %v6095_v46, %v1839_v15 }
 0x738   :  { %v2067_v44 = vadd.f32 %v2066_v43, %v6516_v54 }
 0x73a   :  { %6096 = vtanh.f32 %v2067_v44 }
 0x744   :  { %v6097_v50 = vpop.eup %6096 }
 0x745   :  { %v2070_v53 = vmul.f32 %v6097_v50, %v2069_v49  ;;  %v2343_v50 = vld [vmem:[%s7157_s15 + $0x8] sm:$0xff] }
 0x747   :  { %v6715_v51 = vadd.f32 %v2072_v55, %v2070_v53  ;;  %v2346_v53 = vld [vmem:[%s7158_s16] sm:$0xff]  ;;  %v2347_v55 = vld [vmem:[%s7158_s16 + $0x8] sm:$0xff] }
 0x749   :  { %5348 = vmatmul.mubr.msk.f32.vlgmr.msra.gmra.mrb[26].mxu0 %vm390_vm2, %v6715_v51  ;;  %5359 = vmatmul.mubr.msk.f32.vlgmr.msra.gmra.mrb[28].mxu1 %vm390_vm2, %v6715_v51  ;;  %v2315_v42 = vrot.slane %v6715_v51, 4 }
 0x74a   :  { %5841 = vmatpush3.bf16.msra.mxu0 %v6456_v28  ;;  %5848 = vmatpush3.bf16.msra.mxu1 %v5845_v57  ;;  %v2332_v28 = vld [vmem:[%s7154_s12 + $0x10] sm:$0xff] }
 0x74b   :  { %5380 = vmatprep.mubr.msk.f32.mxu1 %vm390_vm2, %v6731_v63  ;;  %5842 = vmatprep.subr.bf16.mxu0 %v6236_v23  ;;  %v5857_v22 = vpack.c.bf16 %v2333_v2, %v2332_v28  ;;  %v6894_v28 = vld [vmem:[%s7159_s17] ss:$0 sm:$0xff] }
 0x74c   :  { %5850 = vmatprep.subr.bf16.mxu1 %v5849_v60  ;;  %5369 = vmatprep.mubr.msk.f32.mxu0 %vm6237_vm1, %v6238_v29 }
 0x74e   :  { %5844 = vmatpush3.bf16.msra.mxu0 %v6473_v32  ;;  %5852 = vmatpush3.bf16.msra.mxu1 %v5849_v60  ;;  %v2334_v32 = vld [vmem:[%s7155_s13] sm:$0xff]  ;;  %v6847_v60 = vpack.c.bf16 %v2347_v55, %v2346_v53 }
 0x74f   :  { %5854 = vmatprep.subr.bf16.mxu0 %v5853_v0  ;;  %v5861_v48 = vpack.c.bf16 %v2335_v37, %v2334_v32  ;;  %v4746_v32 = vld [vmem:[%s7161_s19] ss:$0 sm:$0xff] }
 0x751   :  { %5370 = vmatmul.mubr.msk.f32.vlgmr.msra.gmra.mrb[28].mxu0 %vm390_vm2, %v6715_v51  ;;  %5381 = vmatmul.mubr.msk.f32.vlgmr.msra.gmra.mrb[30].mxu1 %vm390_vm2, %v6748_v1 }
 0x752   :  { %5383 = vmatprep.mubr.msk.f32.mxu1 %vm390_vm2, %v6757_v38  ;;  %5856 = vmatpush3.bf16.msra.mxu0 %v5853_v0  ;;  %v6865_v0 = vpack.c.bf16 %v2349_v62, %v2348_v61 }
 0x753   :  { %5394 = vmatprep.mubr.msk.f32.mxu0 %vm390_vm2, %v6731_v63  ;;  %5858 = vmatprep.subr.bf16.mxu0 %v5857_v22 }
 0x754   :  { %5862 = vmatprep.subr.bf16.mxu1 %v5861_v48 }
 0x755   :  { %5864 = vmatpush3.bf16.msra.mxu1 %v5861_v48 }
 0x756   :  { %5860 = vmatpush3.bf16.msra.mxu0 %v5857_v22  ;;  %5866 = vmatprep.subr.bf16.mxu1 %v5865_v6 }
 0x757   :  { %5869 = vmatprep.subr.bf16.mxu0 %v6236_v23 }
 0x759   :  { %5395 = vmatmul.mubr.msk.f32.vlgmr.msra.gmra.mrb[30].mxu0 %vm390_vm2, %v6748_v1  ;;  %5868 = vmatpush3.bf16.msra.mxu1 %v5865_v6 }
 0x75a   :  { %5397 = vmatprep.mubr.msk.f32.mxu0 %vm390_vm2, %v6757_v38  ;;  %5871 = vmatpush3.bf16.msra.mxu0 %v6780_v3 }
 0x75b   :  { %5872 = vmatprep.subr.bf16.mxu0 %v6236_v23  ;;  %5875 = vmatprep.subr.bf16.mxu1 %v6236_v23 }
 0x75e   :  { %5874 = vmatpush3.bf16.msra.mxu0 %v6796_v56 }
 0x75f   :  { %5881 = vmatprep.subr.bf16.mxu0 %v6236_v23 }
 0x81c   :  { %v2143_v10 = vpop.f32.mrb[26].mxu0  ;;  %v2213_v47 = vpop.f32.mrb[28].mxu1 }
 0x81d   :  { %v2288_v11 = vrot.slane %v2143_v10, 4  ;;  %v5349_v12 = vpop.f32.mrb[27].mxu0  ;;  %v5360_v13 = vpop.f32.mrb[29].mxu1  ;;  %v2298_v14 = vrot.slane %v2213_v47, 4 }
 0x81f   :  { %v2290_v15 = vadd.f32 %v2288_v11, %v6496_v36  ;;  %v2300_v24 = vadd.f32 %v2298_v14, %v6514_v52 }
 0x821   :  { %v4734_v17 = vmul.f32 -1.442695, %v2290_v15  ;;  %v4735_v20 = vmul.f32 -1.442695, %v2300_v24 }
 0x823   :  { %6098 = vpow2.f32 %v4734_v17 }
 0x824   :  { %v2283_v57 = vpop.f32.mrb[28].mxu0  ;;  %v6803_v16 = vpop.f32.mrb[30].mxu1  ;;  %6100 = vpow2.f32 %v4735_v20 }
 0x825   :  { %v5371_v19 = vpop.f32.mrb[29].mxu0  ;;  %v6805_v18 = vpop.f32.mrb[31].mxu1  ;;  %v2284_v30 = vadd.f32 %v6526_v8, %v2283_v57  ;;  %v2342_v8 = vld [vmem:[%s7157_s15] sm:$0xff] }
 0x826   :  { %v6839_v58 = vpack.c.bf16 %v2343_v50, %v2342_v8  ;;  %v6909_v37 = vadd.f32 %v6894_v28, %v6805_v18 }
 0x827   :  { %v2308_v31 = vrot.slane %v2284_v30, 4 }
 0x82c   :  { %v6807_v21 = vpop.f32.mrb[30].mxu0 }
 0x82d   :  { %v6099_v26 = vpop.eup %6098  ;;  %v6809_v27 = vpop.f32.mrb[31].mxu0 }
 0x82e   :  { %v2294_v25 = vadd.f32 1.0, %v6099_v26  ;;  %v6101_v36 = vpop.eup %6100  ;;  %v2530_v13 = vadd.f32 %v6917_v40, %v6809_v27  ;;  %v6928_v26 = vld [vmem:[%s7162_s20] ss:$0 sm:$0xff] }
 0x82f   :  { %v2304_v52 = vadd.f32 1.0, %v6101_v36 }
 0x830   :  { %6102 = vrcp.f32 %v2294_v25 }
 0x831   :  { %6104 = vrcp.f32 %v2304_v52 }
 0x83a   :  { %v6103_v33 = vpop.eup %6102 }
 0x83b   :  { %v2310_v34 = vmul.f32 %v6103_v33, %v2308_v31  ;;  %v6105_v39 = vpop.eup %6104 }
 0x83c   :  { %v2313_v41 = vsub.f32 1.0, %v6105_v39  ;;  %v2317_v46 = vmul.f32 %v6105_v39, %v2315_v42 }
 0x83d   :  { %v2311_v35 = vadd.f32 %v2310_v34, %v6516_v54 }
 0x83f   :  { %6106 = vtanh.f32 %v2311_v35 }
 0x849   :  { %v6107_v43 = vpop.eup %6106 }
 0x84a   :  { %v2314_v44 = vmul.f32 %v6107_v43, %v2313_v41 }
 0x84c   :  { %v6814_v49 = vadd.f32 %v2317_v46, %v2314_v44 }
 0x84e   :  { %v2325_v54 = vsel %vm2321_vm3, %v6715_v51, %v6814_v49  ;;  %2320 = vst.msk [vmem:[#allocation4 - $0x4] sm:$0xf0] %vm2319_vm4, %v6814_v49  ;;  %v2345_v51 = vld [vmem:[%s7157_s15 + $0x18] sm:$0xff] }
 0x84f   :  { %5384 = vmatmul.mubr.msk.f32.gmra.mrb[32].mxu1 %vm390_vm2, %v2325_v54  ;;  %5398 = vmatmul.mubr.msk.f32.gmra.mrb[32].mxu0 %vm390_vm2, %v2325_v54 }
 0x850   :  { %5408 = vmatprep.mubr.msk.f32.mxu1 %vm390_vm2, %v6731_v63  ;;  %5422 = vmatprep.mubr.msk.f32.mxu0 %vm6237_vm1, %v6238_v29  ;;  %v6861_v63 = vpack.c.bf16 %v2345_v51, %v2344_v59 }
 0x853   :  { %5409 = vmatmul.mubr.msk.f32.vlgmr.msra.gmra.mrb[34].mxu1 %vm390_vm2, %v6748_v1  ;;  %5423 = vmatmul.mubr.f32.vlgmr.msra.gmra.mrb[34].mxu0 %v6238_v29 }
 0x854   :  { %5411 = vmatprep.mubr.msk.f32.mxu1 %vm390_vm2, %v6757_v38  ;;  %5877 = vmatpush3.bf16.msra.mxu1 %v6839_v58 }
 0x855   :  { %5878 = vmatprep.subr.bf16.mxu1 %v6236_v23  ;;  %5883 = vmatpush3.bf16.msra.mxu0 %v6847_v60 }
 0x856   :  { %5884 = vmatprep.subr.bf16.mxu0 %v6236_v23  ;;  %5444 = vmatprep.mubr.msk.f32.mxu0 %vm6237_vm1, %v6238_v29 }
 0x857   :  { %5412 = vmatmul.mubr.msk.f32.gmra.mrb[36].mxu1 %vm390_vm2, %v2325_v54 }
 0x858   :  { %5880 = vmatpush3.bf16.msra.mxu1 %v6861_v63  ;;  %5433 = vmatprep.mubr.msk.f32.mxu1 %vm6237_vm1, %v6238_v29 }
 0x859   :  { %5886 = vmatpush3.bf16.msra.mxu0 %v6865_v0  ;;  %5887 = vmatprep.subr.bf16.mxu1 %v6236_v23 }
 0x85a   :  { %5893 = vmatprep.subr.bf16.mxu0 %v6236_v23 }
 0x85b   :  { %5434 = vmatmul.mubr.f32.vlgmr.msra.gmra.mrb[38].mxu1 %v6238_v29 }
 0x85c   :  { %5445 = vmatmul.mubr.f32.vlgmr.msra.gmra.mrb[36].mxu0 %v6238_v29  ;;  %5889 = vmatpush3.bf16.msra.mxu1 %v6780_v3 }
 0x85d   :  { %5895 = vmatpush3.bf16.msra.mxu0 %v6839_v58  ;;  %5890 = vmatprep.subr.bf16.mxu1 %v6236_v23 }
 0x85e   :  { %5896 = vmatprep.subr.bf16.mxu0 %v6236_v23  ;;  %5455 = vmatprep.mubr.msk.f32.mxu1 %vm6237_vm1, %v6238_v29 }
 0x85f   :  { %5466 = vmatprep.mubr.msk.f32.mxu0 %vm6237_vm1, %v6238_v29 }
 0x860   :  { %5892 = vmatpush3.bf16.msra.mxu1 %v6796_v56 }
 0x861   :  { %5898 = vmatpush3.bf16.msra.mxu0 %v6861_v63  ;;  %5899 = vmatprep.subr.bf16.mxu1 %v6236_v23 }
 0x862   :  { %5905 = vmatprep.subr.bf16.mxu0 %v6236_v23 }
 0x922   :  { %v6896_v2 = vpop.f32.mrb[32].mxu1  ;;  %v6898_v22 = vpop.f32.mrb[32].mxu0 }
 0x923   :  { %v6900_v1 = vpop.f32.mrb[33].mxu1  ;;  %v6902_v38 = vpop.f32.mrb[33].mxu0 }
 0x926   :  { %v5410_v9 = vpop.f32.mrb[34].mxu1  ;;  %v2705_v48 = vpop.f32.mrb[34].mxu0 }
 0x927   :  { %v6911_v45 = vadd.f32 %v5410_v9, %v4746_v32  ;;  %v2855_v4 = vadd.f32 %v2705_v48, %v6909_v37  ;;  %v2620_v5 = vpop.f32.mrb[35].mxu1  ;;  %v5424_v6 = vpop.f32.mrb[35].mxu0 }
 0x928   :  { %v2621_v52 = vadd.f32 %v4746_v32, %v2620_v5 }
 0x929   :  { %v4752_v7 = vmul.f32 -1.442695, %v2855_v4 }
 0x92a   :  { %v5413_v10 = vpop.f32.mrb[36].mxu1 }
 0x92b   :  { %6108 = vpow2.f32 %v4752_v7  ;;  %v6919_v47 = vadd.f32 %v5413_v10, %v4746_v32  ;;  %v2630_v11 = vpop.f32.mrb[37].mxu1 }
 0x92c   :  { %v6921_v12 = vadd.f32 %v4746_v32, %v2630_v11 }
 0x92e   :  { %v2775_v14 = vpop.f32.mrb[38].mxu1 }
 0x92f   :  { %v2862_v15 = vadd.f32 %v2775_v14, %v2530_v13  ;;  %v5435_v17 = vpop.f32.mrb[39].mxu1  ;;  %v2851_v24 = vpop.f32.mrb[36].mxu0 }
 0x930   :  { %v5446_v57 = vpop.f32.mrb[37].mxu0  ;;  %v2852_v30 = vadd.f32 %v6928_v26, %v2851_v24 }
 0x931   :  { %v4753_v19 = vmul.f32 -1.442695, %v2862_v15 }
 0x933   :  { %6110 = vpow2.f32 %v4753_v19 }
 0x935   :  { %v6109_v18 = vpop.eup %6108 }
 0x936   :  { %v2859_v20 = vadd.f32 1.0, %v6109_v18 }
 0x938   :  { %6112 = vrcp.f32 %v2859_v20  ;;  %v2444_v20 = vadd.f32 %v6803_v16, %v6894_v28 }
 0x93d   :  { %v6111_v25 = vpop.eup %6110 }
 0x93e   :  { %v2866_v36 = vadd.f32 1.0, %v6111_v25 }
 0x940   :  { %6114 = vrcp.f32 %v2866_v36 }
 0x942   :  { %v6113_v27 = vpop.eup %6112 }
 0x943   :  { %v2869_v31 = vmul.f32 %v6113_v27, %v2852_v30 }
 0x945   :  { %v2870_v33 = vadd.f32 %v2869_v31, %v2621_v52  ;;  %v2535_v31 = vadd.f32 %v6807_v21, %v6917_v40 }
 0x947   :  { %6116 = vtanh.f32 %v2870_v33 }
 0x94a   :  { %v6115_v34 = vpop.eup %6114 }
 0x94b   :  { %v2872_v35 = vsub.f32 1.0, %v6115_v34  ;;  %v2874_v42 = vmul.f32 0.0, %v6115_v34 }
 0x951   :  { %v6117_v39 = vpop.eup %6116 }
 0x952   :  { %v2873_v41 = vmul.f32 %v6117_v39, %v2872_v35 }
 0x954   :  { %v2875_v43 = vadd.f32 %v2874_v42, %v2873_v41 }
 0x956   :  { %5456 = vmatmul.mubr.msk.f32.vlgmr.msra.gmra.mrb[40].mxu1 %vm390_vm2, %v2875_v43  ;;  %5467 = vmatmul.mubr.msk.f32.vlgmr.msra.gmra.mrb[38].mxu0 %vm390_vm2, %v2875_v43  ;;  %v3117_v11 = vrot.slane %v2875_v43, 4 }
 0x957   :  { %5901 = vmatpush3.bf16.msra.mxu1 %v6847_v60  ;;  %5477 = vmatprep.mubr.msk.f32.mxu1 %vm6237_vm1, %v6238_v29 }
 0x958   :  { %5902 = vmatprep.subr.bf16.mxu1 %v6236_v23  ;;  %5907 = vmatpush3.bf16.msra.mxu0 %v6780_v3 }
 0x959   :  { %5908 = vmatprep.subr.bf16.mxu0 %v6236_v23  ;;  %5488 = vmatprep.mubr.msk.f32.mxu0 %vm6237_vm1, %v6238_v29 }
 0x95b   :  { %5904 = vmatpush3.bf16.msra.mxu1 %v6865_v0 }
 0x95c   :  { %5911 = vmatprep.subr.bf16.mxu1 %v6236_v23  ;;  %5910 = vmatpush3.bf16.msra.mxu0 %v6796_v56 }
 0x95d   :  { %5917 = vmatprep.subr.bf16.mxu0 %v6236_v23 }
 0x95e   :  { %5478 = vmatmul.mubr.msk.f32.vlgmr.msra.gmra.mrb[42].mxu1 %vm390_vm2, %v2875_v43 }
 0x95f   :  { %5913 = vmatpush3.bf16.msra.mxu1 %v6839_v58  ;;  %5499 = vmatprep.mubr.msk.f32.mxu1 %vm6237_vm1, %v6238_v29 }
 0x960   :  { %5914 = vmatprep.subr.bf16.mxu1 %v6236_v23 }
 0x963   :  { %5916 = vmatpush3.bf16.msra.mxu1 %v6861_v63 }
 0x964   :  { %5923 = vmatprep.subr.bf16.mxu1 %v6236_v23 }
 0xa29   :  { %v2945_v44 = vpop.f32.mrb[40].mxu1  ;;  %v3015_v46 = vpop.f32.mrb[38].mxu0 }
 0xa2a   :  { %v3090_v8 = vrot.slane %v2945_v44, 4  ;;  %v3100_v50 = vrot.slane %v3015_v46, 4  ;;  %v5457_v54 = vpop.f32.mrb[41].mxu1  ;;  %v5468_v53 = vpop.f32.mrb[39].mxu0 }
 0xa2c   :  { %v3092_v55 = vadd.f32 %v3090_v8, %v6909_v37  ;;  %v3102_v59 = vadd.f32 %v3100_v50, %v2530_v13 }
 0xa2e   :  { %v4757_v51 = vmul.f32 -1.442695, %v3092_v55  ;;  %v4758_v61 = vmul.f32 -1.442695, %v3102_v59 }
 0xa30   :  { %6118 = vpow2.f32 %v4757_v51 }
 0xa31   :  { %6120 = vpow2.f32 %v4758_v61  ;;  %v3085_v62 = vpop.f32.mrb[42].mxu1 }
 0xa32   :  { %v5479_v32 = vpop.f32.mrb[43].mxu1  ;;  %v3086_v6 = vadd.f32 %v6928_v26, %v3085_v62 }
 0xa34   :  { %v3110_v7 = vrot.slane %v3086_v6, 4 }
 0xa3a   :  { %v6119_v9 = vpop.eup %6118 }
 0xa3b   :  { %v6121_v48 = vpop.eup %6120  ;;  %v3096_v4 = vadd.f32 1.0, %v6119_v9 }
 0xa3c   :  { %v3106_v5 = vadd.f32 1.0, %v6121_v48 }
 0xa3d   :  { %6122 = vrcp.f32 %v3096_v4 }
 0xa3e   :  { %6124 = vrcp.f32 %v3106_v5 }
 0xa47   :  { %v6123_v10 = vpop.eup %6122 }
 0xa48   :  { %v6125_v14 = vpop.eup %6124  ;;  %v3112_v37 = vmul.f32 %v6123_v10, %v3110_v7 }
 0xa49   :  { %v3119_v13 = vmul.f32 %v6125_v14, %v3117_v11  ;;  %v3115_v17 = vsub.f32 1.0, %v6125_v14 }
 0xa4a   :  { %v3113_v15 = vadd.f32 %v3112_v37, %v2621_v52 }
 0xa4c   :  { %6126 = vtanh.f32 %v3113_v15 }
 0xa56   :  { %v6127_v24 = vpop.eup %6126 }
 0xa57   :  { %v3116_v57 = vmul.f32 %v6127_v24, %v3115_v17 }
 0xa59   :  { %v3120_v19 = vadd.f32 %v3119_v13, %v3116_v57 }
 0xa5b   :  { %v3122_v18 = vrot.slane %v3120_v19, 4 }
 0xa5d   :  { %5489 = vmatmul.mubr.msk.f32.vlgmr.msra.gmra.mrb[40].mxu0 %vm390_vm2, %v3122_v18  ;;  %5500 = vmatmul.mubr.msk.f32.vlgmr.msra.gmra.mrb[44].mxu1 %vm390_vm2, %v3122_v18 }
 0xa5e   :  { %5919 = vmatpush3.bf16.msra.mxu0 %v6847_v60  ;;  %5510 = vmatprep.mubr.msk.f32.mxu0 %vm6237_vm1, %v6238_v29 }
 0xa5f   :  { %5920 = vmatprep.subr.bf16.mxu0 %v6236_v23  ;;  %5925 = vmatpush3.bf16.msra.mxu1 %v6780_v3 }
 0xa60   :  { %5926 = vmatprep.subr.bf16.mxu1 %v6236_v23  ;;  %5521 = vmatprep.mubr.msk.f32.mxu1 %vm6237_vm1, %v6238_v29 }
 0xa62   :  { %5922 = vmatpush3.bf16.msra.mxu0 %v6865_v0 }
 0xa63   :  { %5929 = vmatprep.subr.bf16.mxu0 %v6236_v23  ;;  %5928 = vmatpush3.bf16.msra.mxu1 %v6796_v56 }
 0xa64   :  { %5935 = vmatprep.subr.bf16.mxu1 %v6236_v23 }
 0xa65   :  { %5511 = vmatmul.mubr.msk.f32.vlgmr.msra.gmra.mrb[42].mxu0 %vm390_vm2, %v3122_v18 }
 0xa66   :  { %5931 = vmatpush3.bf16.msra.mxu0 %v6839_v58  ;;  %5532 = vmatprep.mubr.msk.f32.mxu0 %vm6237_vm1, %v6238_v29 }
 0xa67   :  { %5932 = vmatprep.subr.bf16.mxu0 %v6236_v23 }
 0xa6a   :  { %5934 = vmatpush3.bf16.msra.mxu0 %v6861_v63 }
 0xa6b   :  { %5941 = vmatprep.subr.bf16.mxu0 %v6236_v23 }
 0xb30   :  { %v3191_v25 = vpop.f32.mrb[40].mxu0  ;;  %v3261_v36 = vpop.f32.mrb[44].mxu1 }
 0xb31   :  { %v3335_v30 = vadd.f32 %v3191_v25, %v2444_v20  ;;  %v5490_v27 = vpop.f32.mrb[41].mxu0  ;;  %v5501_v52 = vpop.f32.mrb[45].mxu1  ;;  %v3342_v34 = vadd.f32 %v3261_v36, %v2535_v31 }
 0xb33   :  { %v4762_v33 = vmul.f32 -1.442695, %v3335_v30  ;;  %v4763_v35 = vmul.f32 -1.442695, %v3342_v34 }
 0xb35   :  { %6128 = vpow2.f32 %v4762_v33 }
 0xb36   :  { %6130 = vpow2.f32 %v4763_v35 }
 0xb38   :  { %v3331_v39 = vpop.f32.mrb[42].mxu0 }
 0xb39   :  { %v5512_v41 = vpop.f32.mrb[43].mxu0  ;;  %v3332_v46 = vadd.f32 %v6928_v26, %v3331_v39 }
 0xb3f   :  { %v6129_v42 = vpop.eup %6128 }
 0xb40   :  { %v3339_v43 = vadd.f32 1.0, %v6129_v42  ;;  %v6131_v44 = vpop.eup %6130 }
 0xb41   :  { %v3346_v16 = vadd.f32 1.0, %v6131_v44 }
 0xb42   :  { %6132 = vrcp.f32 %v3339_v43 }
 0xb43   :  { %6134 = vrcp.f32 %v3346_v16  ;;  %v2540_v16 = vadd.f32 %v6917_v40, %v6902_v38 }
 0xb4c   :  { %v6133_v8 = vpop.eup %6132 }
 0xb4d   :  { %v3349_v50 = vmul.f32 %v6133_v8, %v3332_v46  ;;  %v6135_v21 = vpop.eup %6134 }
 0xb4e   :  { %v3352_v53 = vsub.f32 1.0, %v6135_v21  ;;  %v3355_v51 = vmul.f32 %v6135_v21, %v3122_v18 }
 0xb4f   :  { %v3350_v54 = vadd.f32 %v3349_v50, %v6911_v45 }
 0xb51   :  { %6136 = vtanh.f32 %v3350_v54 }
 0xb5b   :  { %v6137_v55 = vpop.eup %6136 }
 0xb5c   :  { %v3353_v59 = vmul.f32 %v6137_v55, %v3352_v53 }
 0xb5e   :  { %v3356_v61 = vadd.f32 %v3355_v51, %v3353_v59 }
 0xb60   :  { %5522 = vmatmul.mubr.msk.f32.vlgmr.msra.gmra.mrb[46].mxu1 %vm390_vm2, %v3356_v61  ;;  %5533 = vmatmul.mubr.msk.f32.vlgmr.msra.gmra.mrb[44].mxu0 %vm390_vm2, %v3356_v61  ;;  %v3598_v25 = vrot.slane %v3356_v61, 4 }
 0xb61   :  { %5937 = vmatpush3.bf16.msra.mxu1 %v6847_v60  ;;  %5543 = vmatprep.mubr.msk.f32.mxu1 %vm6237_vm1, %v6238_v29 }
 0xb62   :  { %5938 = vmatprep.subr.bf16.mxu1 %v6236_v23  ;;  %5943 = vmatpush3.bf16.msra.mxu0 %v6780_v3 }
 0xb63   :  { %5944 = vmatprep.subr.bf16.mxu0 %v6236_v23  ;;  %5554 = vmatprep.mubr.msk.f32.mxu0 %vm6237_vm1, %v6238_v29 }
 0xb65   :  { %5940 = vmatpush3.bf16.msra.mxu1 %v6865_v0 }
 0xb66   :  { %5947 = vmatprep.subr.bf16.mxu1 %v6236_v23  ;;  %5946 = vmatpush3.bf16.msra.mxu0 %v6796_v56 }
 0xb67   :  { %5953 = vmatprep.subr.bf16.mxu0 %v6236_v23 }
 0xb68   :  { %5544 = vmatmul.mubr.msk.f32.vlgmr.msra.gmra.mrb[48].mxu1 %vm390_vm2, %v3356_v61 }
 0xb69   :  { %5949 = vmatpush3.bf16.msra.mxu1 %v6839_v58  ;;  %5565 = vmatprep.mubr.msk.f32.mxu1 %vm6237_vm1, %v6238_v29 }
 0xb6a   :  { %5950 = vmatprep.subr.bf16.mxu1 %v6236_v23 }
 0xb6d   :  { %5952 = vmatpush3.bf16.msra.mxu1 %v6861_v63 }
 0xb6e   :  { %5959 = vmatprep.subr.bf16.mxu1 %v6236_v23 }
 0xc33   :  { %v3426_v62 = vpop.f32.mrb[46].mxu1  ;;  %v3496_v32 = vpop.f32.mrb[44].mxu0 }
 0xc34   :  { %v3571_v9 = vrot.slane %v3426_v62, 4  ;;  %v3581_v48 = vrot.slane %v3496_v32, 4  ;;  %v5523_v4 = vpop.f32.mrb[47].mxu1  ;;  %v5534_v5 = vpop.f32.mrb[45].mxu0 }
 0xc36   :  { %v3573_v6 = vadd.f32 %v3571_v9, %v2444_v20  ;;  %v3583_v7 = vadd.f32 %v3581_v48, %v2535_v31 }
 0xc38   :  { %v4767_v10 = vmul.f32 -1.442695, %v3573_v6  ;;  %v4768_v11 = vmul.f32 -1.442695, %v3583_v7 }
 0xc3a   :  { %6138 = vpow2.f32 %v4767_v10 }
 0xc3b   :  { %6140 = vpow2.f32 %v4768_v11  ;;  %v3566_v14 = vpop.f32.mrb[48].mxu1 }
 0xc3c   :  { %v5545_v37 = vpop.f32.mrb[49].mxu1  ;;  %v3567_v57 = vadd.f32 %v6928_v26, %v3566_v14 }
 0xc3e   :  { %v3591_v19 = vrot.slane %v3567_v57, 4 }
 0xc44   :  { %v6139_v13 = vpop.eup %6138 }
 0xc45   :  { %v6141_v15 = vpop.eup %6140  ;;  %v3577_v17 = vadd.f32 1.0, %v6139_v13 }
 0xc46   :  { %v3587_v24 = vadd.f32 1.0, %v6141_v15 }
 0xc47   :  { %6142 = vrcp.f32 %v3577_v17 }
 0xc48   :  { %6144 = vrcp.f32 %v3587_v24 }
 0xc51   :  { %v6143_v18 = vpop.eup %6142 }
 0xc52   :  { %v6145_v36 = vpop.eup %6144  ;;  %v3593_v20 = vmul.f32 %v6143_v18, %v3591_v19 }
 0xc53   :  { %v3600_v30 = vmul.f32 %v6145_v36, %v3598_v25  ;;  %v3596_v52 = vsub.f32 1.0, %v6145_v36 }
 0xc54   :  { %v3594_v27 = vadd.f32 %v3593_v20, %v6911_v45  ;;  %v2449_v45 = vadd.f32 %v6894_v28, %v6900_v1 }
 0xc56   :  { %6146 = vtanh.f32 %v3594_v27 }
 0xc60   :  { %v6147_v31 = vpop.eup %6146 }
 0xc61   :  { %v3597_v33 = vmul.f32 %v6147_v31, %v3596_v52 }
 0xc63   :  { %v3601_v34 = vadd.f32 %v3600_v30, %v3597_v33 }
 0xc65   :  { %v3603_v35 = vrot.slane %v3601_v34, 4 }
 0xc67   :  { %5555 = vmatmul.mubr.msk.f32.vlgmr.msra.gmra.mrb[46].mxu0 %vm390_vm2, %v3603_v35  ;;  %5566 = vmatmul.mubr.msk.f32.vlgmr.msra.gmra.mrb[50].mxu1 %vm390_vm2, %v3603_v35 }
 0xc68   :  { %5955 = vmatpush3.bf16.msra.mxu0 %v6847_v60  ;;  %5576 = vmatprep.mubr.msk.f32.mxu0 %vm6237_vm1, %v6238_v29 }
 0xc69   :  { %5956 = vmatprep.subr.bf16.mxu0 %v6236_v23  ;;  %5961 = vmatpush3.bf16.msra.mxu1 %v6780_v3 }
 0xc6a   :  { %5962 = vmatprep.subr.bf16.mxu1 %v6236_v23  ;;  %5587 = vmatprep.mubr.msk.f32.mxu1 %vm6237_vm1, %v6238_v29 }
 0xc6c   :  { %5958 = vmatpush3.bf16.msra.mxu0 %v6865_v0 }
 0xc6d   :  { %5965 = vmatprep.subr.bf16.mxu0 %v6236_v23  ;;  %5964 = vmatpush3.bf16.msra.mxu1 %v6796_v56 }
 0xc6e   :  { %5971 = vmatprep.subr.bf16.mxu1 %v6236_v23 }
 0xc6f   :  { %5577 = vmatmul.mubr.msk.f32.vlgmr.msra.gmra.mrb[48].mxu0 %vm390_vm2, %v3603_v35 }
 0xc70   :  { %5967 = vmatpush3.bf16.msra.mxu0 %v6839_v58  ;;  %5598 = vmatprep.mubr.msk.f32.mxu0 %vm6237_vm1, %v6238_v29 }
 0xc71   :  { %5968 = vmatprep.subr.bf16.mxu0 %v6236_v23 }
 0xc74   :  { %5970 = vmatpush3.bf16.msra.mxu0 %v6861_v63 }
 0xc75   :  { %5977 = vmatprep.subr.bf16.mxu0 %v6236_v23 }
 0xd3a   :  { %v3672_v39 = vpop.f32.mrb[46].mxu0  ;;  %v3742_v41 = vpop.f32.mrb[50].mxu1 }
 0xd3b   :  { %v3816_v42 = vadd.f32 %v3672_v39, %v2449_v45  ;;  %v5556_v43 = vpop.f32.mrb[47].mxu0  ;;  %v5567_v44 = vpop.f32.mrb[51].mxu1  ;;  %v3823_v8 = vadd.f32 %v3742_v41, %v2540_v16 }
 0xd3d   :  { %v4772_v46 = vmul.f32 -1.442695, %v3816_v42  ;;  %v4773_v50 = vmul.f32 -1.442695, %v3823_v8 }
 0xd3f   :  { %6148 = vpow2.f32 %v4772_v46 }
 0xd40   :  { %6150 = vpow2.f32 %v4773_v50 }
 0xd42   :  { %v3812_v54 = vpop.f32.mrb[48].mxu0 }
 0xd43   :  { %v5578_v21 = vpop.f32.mrb[49].mxu0  ;;  %v3813_v51 = vadd.f32 %v6928_v26, %v3812_v54 }
 0xd49   :  { %v6149_v53 = vpop.eup %6148 }
 0xd4a   :  { %v3820_v55 = vadd.f32 1.0, %v6149_v53  ;;  %v6151_v59 = vpop.eup %6150 }
 0xd4b   :  { %v3827_v1 = vadd.f32 1.0, %v6151_v59 }
 0xd4c   :  { %6152 = vrcp.f32 %v3820_v55 }
 0xd4d   :  { %6154 = vrcp.f32 %v3827_v1 }
 0xd56   :  { %v6153_v61 = vpop.eup %6152 }
 0xd57   :  { %v3830_v62 = vmul.f32 %v6153_v61, %v3813_v51  ;;  %v6155_v38 = vpop.eup %6154 }
 0xd58   :  { %v3833_v9 = vsub.f32 1.0, %v6155_v38  ;;  %v3836_v5 = vmul.f32 %v6155_v38, %v3603_v35  ;;  %v4566_v38 = vld [vmem:[%s7163_s21] sm:$0xff] }
 0xd59   :  { %v3831_v32 = vadd.f32 %v3830_v62, %v6921_v12 }
 0xd5b   :  { %6156 = vtanh.f32 %v3831_v32 }
 0xd65   :  { %v6157_v48 = vpop.eup %6156 }
 0xd66   :  { %v3834_v4 = vmul.f32 %v6157_v48, %v3833_v9  ;;  %v4567_v9 = vld [vmem:[%s7163_s21 + $0x8] sm:$0xff] }
 0xd68   :  { %v3837_v6 = vadd.f32 %v3836_v5, %v3834_v4 }
 0xd6a   :  { %5588 = vmatmul.mubr.msk.f32.vlgmr.msra.gmra.mrb[52].mxu1 %vm390_vm2, %v3837_v6  ;;  %5599 = vmatmul.mubr.msk.f32.vlgmr.msra.gmra.mrb[50].mxu0 %vm390_vm2, %v3837_v6  ;;  %v4079_v33 = vrot.slane %v3837_v6, 4 }
 0xd6b   :  { %5973 = vmatpush3.bf16.msra.mxu1 %v6847_v60  ;;  %5609 = vmatprep.mubr.msk.f32.mxu1 %vm6237_vm1, %v6238_v29 }
 0xd6c   :  { %5974 = vmatprep.subr.bf16.mxu1 %v6236_v23  ;;  %5979 = vmatpush3.bf16.msra.mxu0 %v6780_v3 }
 0xd6d   :  { %5980 = vmatprep.subr.bf16.mxu0 %v6236_v23  ;;  %5620 = vmatprep.mubr.msk.f32.mxu0 %vm6237_vm1, %v6238_v29 }
 0xd6f   :  { %5976 = vmatpush3.bf16.msra.mxu1 %v6865_v0 }
 0xd70   :  { %5983 = vmatprep.subr.bf16.mxu1 %v6236_v23  ;;  %5982 = vmatpush3.bf16.msra.mxu0 %v6796_v56 }
 0xd71   :  { %5989 = vmatprep.subr.bf16.mxu0 %v6236_v23 }
 0xd72   :  { %5610 = vmatmul.mubr.msk.f32.vlgmr.msra.gmra.mrb[54].mxu1 %vm390_vm2, %v3837_v6  ;;  %v6014_v6 = vpack.c.bf16 %v4567_v9, %v4566_v38 }
 0xd73   :  { %5985 = vmatpush3.bf16.msra.mxu1 %v6839_v58  ;;  %5631 = vmatprep.mubr.msk.f32.mxu1 %vm6237_vm1, %v6238_v29 }
 0xd74   :  { %5986 = vmatprep.subr.bf16.mxu1 %v6236_v23 }
 0xd77   :  { %5988 = vmatpush3.bf16.msra.mxu1 %v6861_v63 }
 0xd78   :  { %5995 = vmatprep.subr.bf16.mxu1 %v6236_v23 }
 0xe3d   :  { %v3907_v7 = vpop.f32.mrb[52].mxu1  ;;  %v3977_v10 = vpop.f32.mrb[50].mxu0 }
 0xe3e   :  { %v4052_v11 = vrot.slane %v3907_v7, 4  ;;  %v4062_v14 = vrot.slane %v3977_v10, 4  ;;  %v5589_v37 = vpop.f32.mrb[53].mxu1  ;;  %v5600_v13 = vpop.f32.mrb[51].mxu0  ;;  %v4568_v10 = vld [vmem:[%s7163_s21 + $0x10] sm:$0xff] }
 0xe3f   :  { %v4578_v37 = vrot.slane %v6814_v49, 4 }
 0xe40   :  { %v4054_v15 = vadd.f32 %v4052_v11, %v2449_v45  ;;  %v4064_v17 = vadd.f32 %v4062_v14, %v2540_v16  ;;  %v4569_v11 = vld [vmem:[%s7163_s21 + $0x18] sm:$0xff] }
 0xe41   :  { %v6017_v14 = vpack.c.bf16 %v4569_v11, %v4568_v10 }
 0xe42   :  { %v4777_v24 = vmul.f32 -1.442695, %v4054_v15  ;;  %v4778_v57 = vmul.f32 -1.442695, %v4064_v17 }
 0xe44   :  { %6158 = vpow2.f32 %v4777_v24 }
 0xe45   :  { %6160 = vpow2.f32 %v4778_v57  ;;  %v4047_v19 = vpop.f32.mrb[54].mxu1 }
 0xe46   :  { %v5611_v18 = vpop.f32.mrb[55].mxu1  ;;  %v4048_v27 = vadd.f32 %v6928_v26, %v4047_v19 }
 0xe48   :  { %v4072_v52 = vrot.slane %v4048_v27, 4 }
 0xe4e   :  { %v6159_v25 = vpop.eup %6158 }
 0xe4f   :  { %v6161_v36 = vpop.eup %6160  ;;  %v4058_v20 = vadd.f32 1.0, %v6159_v25 }
 0xe50   :  { %v4068_v30 = vadd.f32 1.0, %v6161_v36 }
 0xe51   :  { %6162 = vrcp.f32 %v4058_v20 }
 0xe52   :  { %6164 = vrcp.f32 %v4068_v30 }
 0xe5b   :  { %v6163_v31 = vpop.eup %6162 }
 0xe5c   :  { %v6165_v34 = vpop.eup %6164  ;;  %v4074_v35 = vmul.f32 %v6163_v31, %v4072_v52 }
 0xe5d   :  { %v4081_v45 = vmul.f32 %v6165_v34, %v4079_v33  ;;  %v4077_v41 = vsub.f32 1.0, %v6165_v34 }
 0xe5e   :  { %v4075_v39 = vadd.f32 %v4074_v35, %v6921_v12 }
 0xe60   :  { %6166 = vtanh.f32 %v4075_v39 }
 0xe6a   :  { %v6167_v42 = vpop.eup %6166 }
 0xe6b   :  { %v4078_v43 = vmul.f32 %v6167_v42, %v4077_v41 }
 0xe6d   :  { %v4082_v44 = vadd.f32 %v4081_v45, %v4078_v43 }
 0xe6f   :  { %v4084_v16 = vrot.slane %v4082_v44, 4 }
 0xe71   :  { %5621 = vmatmul.mubr.msk.f32.vlgmr.msra.gmra.mrb[52].mxu0 %vm390_vm2, %v4084_v16  ;;  %5632 = vmatmul.mubr.msk.f32.vlgmr.msra.gmra.mrb[56].mxu1 %vm390_vm2, %v4084_v16 }
 0xe72   :  { %5991 = vmatpush3.bf16.msra.mxu0 %v6847_v60  ;;  %5642 = vmatprep.mubr.msk.f32.mxu0 %vm6237_vm1, %v6238_v29 }
 0xe73   :  { %5992 = vmatprep.subr.bf16.mxu0 %v6236_v23  ;;  %5997 = vmatpush3.bf16.msra.mxu1 %v6780_v3  ;;  %v2454_v3 = vadd.f32 %v6896_v2, %v6894_v28 }
 0xe74   :  { %5998 = vmatprep.subr.bf16.mxu1 %v6236_v23  ;;  %5653 = vmatprep.mubr.msk.f32.mxu1 %vm6237_vm1, %v6238_v29 }
 0xe76   :  { %5994 = vmatpush3.bf16.msra.mxu0 %v6865_v0 }
 0xe77   :  { %6001 = vmatprep.subr.bf16.mxu0 %v6236_v23  ;;  %6000 = vmatpush3.bf16.msra.mxu1 %v6796_v56 }
 0xe78   :  { %6007 = vmatprep.subr.bf16.mxu1 %v6236_v23 }
 0xe79   :  { %5643 = vmatmul.mubr.msk.f32.vlgmr.msra.gmra.mrb[54].mxu0 %vm390_vm2, %v4084_v16 }
 0xe7a   :  { %6003 = vmatpush3.bf16.msra.mxu0 %v6839_v58  ;;  %5664 = vmatprep.mubr.msk.f32.mxu0 %vm6237_vm1, %v6238_v29  ;;  %v2545_v58 = vadd.f32 %v6898_v22, %v6917_v40 }
 0xe7b   :  { %6004 = vmatprep.subr.bf16.mxu0 %v6236_v23 }
 0xe7e   :  { %6006 = vmatpush3.bf16.msra.mxu0 %v6861_v63 }
 0xe7f   :  { %6013 = vmatprep.subr.bf16.mxu0 %v6236_v23 }
 0xf44   :  { %v4153_v12 = vpop.f32.mrb[52].mxu0  ;;  %v4223_v56 = vpop.f32.mrb[56].mxu1 }
 0xf45   :  { %v4297_v46 = vadd.f32 %v4153_v12, %v2454_v3  ;;  %v5622_v8 = vpop.f32.mrb[53].mxu0  ;;  %v5633_v50 = vpop.f32.mrb[57].mxu1  ;;  %v4304_v21 = vadd.f32 %v4223_v56, %v2545_v58 }
 0xf47   :  { %v4782_v54 = vmul.f32 -1.442695, %v4297_v46  ;;  %v4783_v53 = vmul.f32 -1.442695, %v4304_v21 }
 0xf49   :  { %6168 = vpow2.f32 %v4782_v54 }
 0xf4a   :  { %6170 = vpow2.f32 %v4783_v53 }
 0xf4c   :  { %v4293_v55 = vpop.f32.mrb[54].mxu0 }
 0xf4d   :  { %v5644_v59 = vpop.f32.mrb[55].mxu0  ;;  %v4294_v2 = vadd.f32 %v6928_v26, %v4293_v55 }
 0xf53   :  { %v6169_v63 = vpop.eup %6168 }
 0xf54   :  { %v4301_v1 = vadd.f32 1.0, %v6169_v63  ;;  %v6171_v51 = vpop.eup %6170 }
 0xf55   :  { %v4308_v28 = vadd.f32 1.0, %v6171_v51 }
 0xf56   :  { %6172 = vrcp.f32 %v4301_v1 }
 0xf57   :  { %6174 = vrcp.f32 %v4308_v28 }
 0xf60   :  { %v6173_v61 = vpop.eup %6172 }
 0xf61   :  { %v4311_v62 = vmul.f32 %v6173_v61, %v4294_v2  ;;  %v6175_v22 = vpop.eup %6174 }
 0xf62   :  { %v4314_v40 = vsub.f32 1.0, %v6175_v22  ;;  %v4317_v5 = vmul.f32 %v6175_v22, %v4084_v16 }
 0xf63   :  { %v4312_v32 = vadd.f32 %v4311_v62, %v6919_v47 }
 0xf65   :  { %6176 = vtanh.f32 %v4312_v32 }
 0xf6f   :  { %v6177_v48 = vpop.eup %6176 }
 0xf70   :  { %v4315_v4 = vmul.f32 %v6177_v48, %v4314_v40 }
 0xf72   :  { %v7087_v7 = vadd.f32 %v4317_v5, %v4315_v4 }
 0xf74   :  { %5654 = vmatmul.mubr.msk.f32.vlgmr.msra.gmra.mrb[58].mxu1 %vm390_vm2, %v7087_v7  ;;  %5665 = vmatmul.mubr.msk.f32.vlgmr.msra.gmra.mrb[56].mxu0 %vm390_vm2, %v7087_v7 }
 0xf75   :  { %6009 = vmatpush3.bf16.msra.mxu1 %v6847_v60  ;;  %6015 = vmatpush3.bf16.msra.mxu0 %v6014_v6 }
 0xf76   :  { %6010 = vmatprep.subr.bf16.mxu1 %v6236_v23  ;;  %6016 = vmatprep.subr.bf16.mxu0 %v6236_v23 }
 0xf77   :  { %5675 = vmatprep.mubr.msk.f32.mxu1 %vm6237_vm1, %v6238_v29  ;;  %5686 = vmatprep.mubr.msk.f32.mxu0 %vm6237_vm1, %v6238_v29 }
 0xf79   :  { %6012 = vmatpush3.bf16.msra.mxu1 %v6865_v0  ;;  %6018 = vmatpush3.bf16.msra.mxu0 %v6017_v14  ;;  %v4789_v0 = vld [vmem:[%s7164_s22] ss:$0 sm:$0xff] }
 0xf7c   :  { %5676 = vmatmul.mubr.msk.f32.vlgmr.msra.gmra.mrb[60].mxu1 %vm390_vm2, %v7087_v7  ;;  %5687 = vmatmul.mubr.msk.f32.vlgmr.msra.gmra.mrb[58].mxu0 %vm390_vm2, %v4578_v37 }
0x1047   :  { %v4388_v60 = vpop.f32.mrb[58].mxu1  ;;  %v4458_v13 = vpop.f32.mrb[56].mxu0 }
0x1048   :  { %v4533_v15 = vrot.slane %v4388_v60, 4  ;;  %v4543_v23 = vrot.slane %v4458_v13, 4  ;;  %v5655_v17 = vpop.f32.mrb[59].mxu1  ;;  %v5666_v24 = vpop.f32.mrb[57].mxu0 }
0x104a   :  { %v4535_v57 = vadd.f32 %v4533_v15, %v2454_v3  ;;  %v4545_v19 = vadd.f32 %v4543_v23, %v2545_v58 }
0x104c   :  { %v4787_v18 = vmul.f32 -1.442695, %v4535_v57  ;;  %v4788_v29 = vmul.f32 -1.442695, %v4545_v19 }
0x104e   :  { %6178 = vpow2.f32 %v4787_v18 }
0x104f   :  { %6180 = vpow2.f32 %v4788_v29  ;;  %v4528_v49 = vpop.f32.mrb[60].mxu1  ;;  %v4647_v25 = vpop.f32.mrb[58].mxu0 }
0x1050   :  { %v4648_v36 = vadd.f32 %v4789_v0, %v4647_v25  ;;  %v5677_v20 = vpop.f32.mrb[61].mxu1  ;;  %v5688_v30 = vpop.f32.mrb[59].mxu0 }
0x1052   :  { %4652 = vst.msk [vmem:[#allocation2] sm:$0xf] %vm4651_vm5, %v4648_v36 }
0x1053   :  { %6199 = shalt.err (!%p6196_p4)
}
0x1054   :  { %s6200_s27 = scalar_lea.hbm %s7165_s23, 64 }
0x1055   :  { %p6201_p5 = scmp.ne.s32.totalorder %s7165_s23, %s6200_s27  ;;  %p6204_p6 = scmp.lt.u32.totalorder %s6200_s27, %s7165_s23 }
0x1057   :  { %p6206_p7 = pnand %p6204_p6, %p6201_p5 }
0x1059   :  { %6209 = shalt.err (!%p6206_p7)
}
0x105a   :  { %4662 = dma.vmem_to_hbm [thread:$0]  %s4660_s5, 64, %s7165_s23, [#allocation3]   ;;  %v6179_v27 = vpop.eup %6178  ;;  %v4529_v34 = vadd.f32 %v6928_v26, %v4528_v49  ;;  %v4560_v39 = vrot.slane %v7087_v7, 4 }
0x105b   :  { %v6181_v52 = vpop.eup %6180  ;;  %v4539_v31 = vadd.f32 1.0, %v6179_v27  ;;  %s6240_s23 = smov [#allocation4]  }
0x105c   :  { %v4549_v33 = vadd.f32 1.0, %v6181_v52  ;;  %v4553_v35 = vrot.slane %v4529_v34, 4  ;;  %s4668_s16 = sshll.u32 %s6240_s23, 4  ;;  %s4669_s16 = int_to_ptr.vmem [resolvable:$true] %s4668_s16 }
0x105d   :  { %6182 = vrcp.f32 %v4539_v31  ;;  %s6210_s7 = scalar_lea.vmem %s4669_s16, 128  ;;  %p6215_p9 = scmp.lt.s32.totalorder %s4669_s16, %s4669_s16 }
0x105e   :  { %6184 = vrcp.f32 %v4549_v33  ;;  %p6211_p8 = scmp.ne.s32.totalorder %s4669_s16, %s6210_s7  ;;  %p6216_p10 = scmp.lt.s32.totalorder %s6210_s7, %s6210_s7 }
0x1060   :  { %p6217_p11 = por %p6216_p10, %p6215_p9 }
0x1062   :  { %p6218_p12 = pnand %p6217_p11, %p6211_p8 }
0x1067   :  { %v6183_v45 = vpop.eup %6182 }
0x1068   :  { %v6185_v41 = vpop.eup %6184  ;;  %v4555_v42 = vmul.f32 %v6183_v45, %v4553_v35 }
0x1069   :  { %v4562_v43 = vmul.f32 %v6185_v41, %v4560_v39  ;;  %v4558_v16 = vsub.f32 1.0, %v6185_v41 }
0x106a   :  { %v4556_v44 = vadd.f32 %v4555_v42, %v6919_v47 }
0x106c   :  { %6186 = vtanh.f32 %v4556_v44 }
0x1076   :  { %v6187_v3 = vpop.eup %6186 }
0x1077   :  { %v4559_v12 = vmul.f32 %v6187_v3, %v4558_v16 }
0x1079   :  { %v4563_v56 = vadd.f32 %v4562_v43, %v4559_v12 }
0x107b   :  { %4565 = vst.msk [vmem:[#allocation4] sm:$0xf0] %vm2319_vm4, %v4563_v56 }
0x107c   :  { %6221 = shalt.err (!%p6218_p12)
}
0x107d   :  { %s6222_s3 = scalar_lea.hbm %s7166_s24, 128 }
0x107e   :  { %p6223_p13 = scmp.ne.s32.totalorder %s7166_s24, %s6222_s3  ;;  %p6226_p0 = scmp.lt.u32.totalorder %s6222_s3, %s7166_s24 }
0x1080   :  { %p6228_p1 = pnand %p6226_p0, %p6223_p13 }
0x1082   :  { %6231 = shalt.err (!%p6228_p1)
}
0x1083   :  { %s6241_s11 = smov 64   ;;  %s6242_s13 = smov 4  }
0x1084   :  { %4674 = dma.vmem_to_hbm [thread:$0]  %s4669_s16, 128, %s7166_s24, [#allocation5], %s6241_s11, %s6241_s11, %s6242_s13  }
0x1085   :  { %6232 = dma.done.wait [#allocation3], 64  }
0x1086   :  { %6233 = vsyncadd [#allocation3], 4294967232 }
0x1087   :  { %6234 = dma.done.wait [#allocation5], 128  }
0x1088   :  { %6235 = vsyncadd [#allocation5], 4294967168 }
0x1089   :  { %4681 = vsyncpa [#allocation3], 1 }
0x108a   :  { %4682 = vsyncpa [#allocation5], 1 }

</bundles_post_ra>
